<compile_context>
chip_gen: v5e
topology: v5e:2x2
jax: 0.10.0
libtpu: 0.0.40
codegen_flags: <defaults>
</compile_context>

<pallas_src>
import functools

import jax
import jax.numpy as jnp
from jax import lax
from jax.experimental import pallas as pl
from jax.experimental.pallas import tpu as pltpu


# ---------------------------------------------------------------------------
# Kernel: out = LayerNorm_per_token_chunk( x @ W + bias ), dummy rows spliced in.
#   x_ref:      (tm, clip_dim)   f32 row tile (dummy / padded slots are zero rows)
#   w_ref:      (clip_dim, W)    bf16 full projection weight, W = tokens*cross
#   params_ref: (3, W)           f32 [bias ; gamma tiled per token ; beta tiled]
#   dummy_ref:  (D, W)           f32 dummy tokens viewed as D wide rows
#   o_ref:      (tm, W)
# Rows whose global index satisfies (row % period) < n_dummy_rows are dummy rows.
# ---------------------------------------------------------------------------
def _proj_ln_dummy_kernel(x_ref, w_ref, params_ref, dummy_ref, o_ref, *,
                          cross_dim, num_tokens, period, n_dummy_rows, eps):
    tm = o_ref.shape[0]

    # One wide MXU matmul per row tile: bf16 operands, f32 accumulation.
    x_bf = x_ref[...].astype(jnp.bfloat16)
    y = jnp.dot(x_bf, w_ref[...], preferred_element_type=jnp.float32)
    y = y + params_ref[0:1, :]                       # projection bias (f32, read once)

    if n_dummy_rows:
        row = pl.program_id(0) * tm + lax.broadcasted_iota(jnp.int32, (tm, 1), 0)
        phase = row % period                          # computed once per grid step

    inv_cross = 1.0 / cross_dim
    # Per-token LayerNorm over lane-aligned cross_dim chunks (static slices are
    # free views when cross_dim % 128 == 0); each chunk is stored directly so no
    # second full-width (tm, W) temporary is materialized.
    for t in range(num_tokens):
        sl = slice(t * cross_dim, (t + 1) * cross_dim)
        c = y[:, sl]
        mean = jnp.sum(c, axis=-1, keepdims=True) * inv_cross
        ex2 = jnp.sum(c * c, axis=-1, keepdims=True) * inv_cross
        var = jnp.maximum(ex2 - mean * mean, 0.0)     # E[x^2] - mean^2
        rstd = lax.rsqrt(var + eps)                   # EUP slot
        out_c = ((c - mean) * rstd) * params_ref[1:2, sl] + params_ref[2:3, sl]

        if n_dummy_rows:
            # Splice dummy tokens into their (zero-input) rows, per chunk.
            for d in range(n_dummy_rows):
                out_c = jnp.where(phase == d, dummy_ref[d:d + 1, sl], out_c)

        o_ref[:, sl] = out_c.astype(o_ref.dtype)      # lane-dense chunk store


def _round_up(x, m):
    return ((x + m - 1) // m) * m


def _row_tiling(n_rows, max_tm=512, min_split_rows=16):
    """Return (row_tile, padded_rows).

    Tiny inputs get a single full-extent tile (per-grid-step overhead, ~0.35us,
    dominates).  Larger inputs are split into >= 2 balanced multiple-of-8 row
    tiles so the "parallel" grid axis shards across v7x's two TensorCores; the
    row count is padded up to a multiple of the tile (padded rows are zero and
    sliced off by the wrapper)."""
    if n_rows < min_split_rows:
        return n_rows, n_rows
    max_tm = max(8, _round_up(max_tm, 8))
    tile = min(max_tm, _round_up(-(-n_rows // 2), 8))
    return tile, _round_up(n_rows, tile)


def _fused_proj_ln(x_rows, w, params, dummy_wide, *, cross_dim, num_tokens,
                   period, n_dummy_rows, row_tile, out_dtype, eps=1e-5,
                   single_buffer_consts=True):
    n_rows, clip_dim = x_rows.shape
    W = num_tokens * cross_dim
    D = dummy_wide.shape[0]
    grid = (n_rows // row_tile,)

    # Grid-constant operands: fetched once (constant index map); request a
    # single VMEM buffer instead of the default double buffer.
    const_kwargs = {}
    if single_buffer_consts:
        const_kwargs = dict(pipeline_mode=pl.Buffered(1))

    kernel = functools.partial(
        _proj_ln_dummy_kernel, cross_dim=cross_dim, num_tokens=num_tokens,
        period=period, n_dummy_rows=n_dummy_rows, eps=eps)

    return pl.pallas_call(
        kernel,
        out_shape=jax.ShapeDtypeStruct((n_rows, W), out_dtype),
        grid_spec=pltpu.PrefetchScalarGridSpec(
            num_scalar_prefetch=0,
            grid=grid,
            in_specs=[
                pl.BlockSpec((row_tile, clip_dim), lambda i: (i, 0)),            # x row tile
                pl.BlockSpec((clip_dim, W), lambda i: (0, 0), **const_kwargs),   # bf16 weight
                pl.BlockSpec((3, W), lambda i: (0, 0), **const_kwargs),          # bias/gamma/beta
                pl.BlockSpec((D, W), lambda i: (0, 0), **const_kwargs),          # dummy wide rows
            ],
            out_specs=pl.BlockSpec((row_tile, W), lambda i: (i, 0)),
        ),
        compiler_params=pltpu.CompilerParams(
            dimension_semantics=("parallel",)),
    )(x_rows, w, params, dummy_wide)


# ---------------------------------------------------------------------------
# Module wrapper (parameters created deterministically in-script).
# ---------------------------------------------------------------------------
class ImageProjDummyModelPallas:
    def __init__(self, key, cross_attention_dim=256, clip_embeddings_dim=128,
                 clip_extra_context_tokens=4, num_dummy_tokens=4, use_magi=False,
                 max_rows_per_tile=512, out_dtype=jnp.float32):
        # TODO(synk): use_magi branch (second Linear on magi embeddings) not wired;
        # the default forward path (magi_image_embeds=None) is implemented exactly.
        assert not use_magi
        self.cross_attention_dim = cross_attention_dim
        self.clip_embeddings_dim = clip_embeddings_dim
        self.clip_extra_context_tokens = clip_extra_context_tokens
        self.num_dummy_tokens = num_dummy_tokens
        self.max_rows_per_tile = max_rows_per_tile
        self.out_dtype = out_dtype

        k_w, k_b, k_d = jax.random.split(key, 3)
        out_dim = clip_extra_context_tokens * cross_attention_dim
        bound = 1.0 / (clip_embeddings_dim ** 0.5)   # torch.nn.Linear default init range
        # Stored as (in_dim, out_dim) so the kernel does x @ W directly; kept in
        # bf16 so the MXU runs its native bf16 path and the resident weight halves.
        self.proj_w = jax.random.uniform(
            k_w, (clip_embeddings_dim, out_dim), jnp.float32, -bound, bound
        ).astype(jnp.bfloat16)
        self.proj_b = jax.random.uniform(k_b, (out_dim,), jnp.float32, -bound, bound)
        self.ln_gamma = jnp.ones((cross_attention_dim,), jnp.float32)
        self.ln_beta = jnp.zeros((cross_attention_dim,), jnp.float32)
        self.dummy_tokens = jax.random.normal(
            k_d, (num_dummy_tokens, cross_attention_dim), jnp.float32)

        # Fused per-lane parameter block (read once per kernel invocation):
        # row 0 = proj bias, row 1 = LN gamma tiled per token, row 2 = LN beta tiled.
        self.params = jnp.stack([
            self.proj_b,
            jnp.tile(self.ln_gamma, clip_extra_context_tokens),
            jnp.tile(self.ln_beta, clip_extra_context_tokens),
        ], axis=0)

    def __call__(self, image_embeds):
        bsz, max_num_ips, clip_dim = image_embeds.shape
        assert clip_dim == self.clip_embeddings_dim
        tokens = self.clip_extra_context_tokens
        cross = self.cross_attention_dim
        nd = self.num_dummy_tokens
        W = tokens * cross

        fuse = nd > 0 and nd % tokens == 0
        if fuse:
            # Each group of `tokens` output positions is one wide row of width W, so
            # the nd dummy positions occupy D = nd // tokens wide rows at the head of
            # each batch. Prepend D zero rows per batch on the (small, clip-wide)
            # input side; the kernel overwrites those output rows with the dummy
            # tokens, so the (large, W-wide) output is written exactly once.
            D = nd // tokens
            period = D + max_num_ips
            x_rows = jnp.pad(image_embeds.astype(jnp.float32),
                             ((0, 0), (D, 0), (0, 0))).reshape(bsz * period, clip_dim)
            dummy_wide = self.dummy_tokens.reshape(D, W)
            n_dummy_rows = D
        else:
            # TODO(synk): when num_dummy_tokens % tokens != 0 the dummy block does not
            # tile into wide rows; fall back to a plain-JAX concat of the tiny slab.
            period, n_dummy_rows = 1, 0
            x_rows = image_embeds.reshape(bsz * max_num_ips, clip_dim).astype(jnp.float32)
            dummy_wide = jnp.zeros((1, W), jnp.float32)

        n_rows = x_rows.shape[0]
        row_tile, padded_rows = _row_tiling(n_rows, self.max_rows_per_tile)
        if padded_rows != n_rows:
            x_rows = jnp.pad(x_rows, ((0, padded_rows - n_rows), (0, 0)))

        kwargs = dict(cross_dim=cross, num_tokens=tokens, period=period,
                      n_dummy_rows=n_dummy_rows, row_tile=row_tile,
                      out_dtype=self.out_dtype)
        try:
            y = _fused_proj_ln(x_rows, self.proj_w, self.params, dummy_wide,
                               single_buffer_consts=True, **kwargs)
        except Exception:
            # TODO(synk): this jax build rejected pl.Buffered(1) single-buffering of
            # the grid-constant operands; fall back to default double-buffering.
            y = _fused_proj_ln(x_rows, self.proj_w, self.params, dummy_wide,
                               single_buffer_consts=False, **kwargs)

        if padded_rows != n_rows:
            y = y[:n_rows]

        if fuse:
            # (bsz*(D+R), tokens*cross) -> (bsz, nd + R*tokens, cross): pure reshape.
            return y.reshape(bsz, period * tokens, cross)

        y = y.reshape(bsz, max_num_ips * tokens, cross)
        dummy = jnp.broadcast_to(self.dummy_tokens[None].astype(y.dtype),
                                 (bsz, nd, cross))
        return jnp.concatenate([dummy, y], axis=1)


# ---------------------------------------------------------------------------
# Reference (pure JAX) for sanity checking.
#   bf16_activations=True mirrors the kernel's bf16 MXU operand cast (tight check);
#   bf16_activations=False keeps activations f32 (loose check, spec semantics with
#   the bf16-stored weight upcast).
# ---------------------------------------------------------------------------
def reference_forward(model, image_embeds, *, bf16_activations=False):
    bsz, m, _ = image_embeds.shape
    x = image_embeds.reshape(bsz * m, -1).astype(jnp.float32)
    if bf16_activations:
        y = jnp.dot(x.astype(jnp.bfloat16), model.proj_w,
                    preferred_element_type=jnp.float32) + model.proj_b
    else:
        y = x @ model.proj_w.astype(jnp.float32) + model.proj_b
    y = y.reshape(bsz, m * model.clip_extra_context_tokens, model.cross_attention_dim)
    mean = y.mean(-1, keepdims=True)
    var = ((y - mean) ** 2).mean(-1, keepdims=True)
    y = (y - mean) / jnp.sqrt(var + 1e-5)
    y = y * model.ln_gamma + model.ln_beta
    dummy = jnp.broadcast_to(model.dummy_tokens[None], (bsz,) + model.dummy_tokens.shape)
    return jnp.concatenate([dummy, y], axis=1)


if __name__ == "__main__":
    root_key = jax.random.PRNGKey(0)

    def run_case(bsz, max_num_ips, clip_dim, cross_dim, tokens, num_dummy,
                 seed, max_rows_per_tile=512):
        k_param, k_in = jax.random.split(jax.random.fold_in(root_key, seed))
        model = ImageProjDummyModelPallas(
            k_param,
            cross_attention_dim=cross_dim,
            clip_embeddings_dim=clip_dim,
            clip_extra_context_tokens=tokens,
            num_dummy_tokens=num_dummy,
            max_rows_per_tile=max_rows_per_tile,
        )
        image_embeds = jax.random.normal(
            k_in, (bsz, max_num_ips, clip_dim), jnp.float32)

        out = jax.block_until_ready(model(image_embeds))
        expected_shape = (bsz, num_dummy + max_num_ips * tokens, cross_dim)
        assert out.shape == expected_shape, (out.shape, expected_shape)

        # Tight check vs a reference using the same bf16 operand casts.
        ref_tight = reference_forward(model, image_embeds, bf16_activations=True)
        err_t = float(jnp.max(jnp.abs(out - ref_tight)))
        assert jnp.allclose(out, ref_tight, atol=2e-3, rtol=2e-3), err_t
        # Loose check vs the f32-activation reference (bf16 cast tolerance).
        ref_f32 = reference_forward(model, image_embeds)
        err_l = float(jnp.max(jnp.abs(out - ref_f32)))
        assert jnp.allclose(out, ref_f32, atol=5e-2, rtol=5e-2), err_l

    # Small shape, fused dummy write, single full-extent row tile.
    run_case(2, 4, 128, 256, 4, 4, seed=0)
    # Larger batch with a capped tile -> 2-step "parallel" grid (multi-tile path,
    # shards across v7x's two TensorCores).
    run_case(16, 4, 128, 256, 4, 4, seed=1, max_rows_per_tile=40)
    # Awkward row count (30) -> padded to a multiple of the tile, then sliced.
    run_case(6, 4, 128, 256, 4, 4, seed=2)
    # num_dummy % tokens != 0 -> unfused fallback path (plain-JAX concat).
    run_case(2, 4, 128, 256, 4, 3, seed=3)
    # num_dummy spanning two wide rows (D=2 splice path).
    run_case(2, 4, 128, 256, 4, 8, seed=4)

    print("KERNEL_OK")
</pallas_src>

<mosaic_0001>
module attributes {stable_mosaic.version = 11 : i64} {
  func.func @_proj_ln_dummy_kernel(%arg0: i32, %arg1: memref<10x128xf32, #tpu.memory_space<vmem>>, %arg2: memref<128x1024xbf16, #tpu.memory_space<vmem>>, %arg3: memref<3x1024xf32, #tpu.memory_space<vmem>>, %arg4: memref<1x1024xf32, #tpu.memory_space<vmem>>, %arg5: memref<10x1024xf32, #tpu.memory_space<vmem>>) attributes {dimension_semantics = [#tpu.dimension_semantics<parallel>], iteration_bounds = array<i64: 1>, scalar_prefetch = 0 : i64, scratch_operands = 0 : i64, tpu.core_type = #tpu.core_type<tc>, window_params = [{transform_indices = @transform_0, window_bounds = array<i64: 10, 128>}, {pipeline_mode = #tpu.pipeline_mode<synchronous>, transform_indices = @transform_1, window_bounds = array<i64: 128, 1024>}, {pipeline_mode = #tpu.pipeline_mode<synchronous>, transform_indices = @transform_2, window_bounds = array<i64: 3, 1024>}, {pipeline_mode = #tpu.pipeline_mode<synchronous>, transform_indices = @transform_3, window_bounds = array<i64: 1, 1024>}, {transform_indices = @transform_4, window_bounds = array<i64: 10, 1024>}]} {
    %c0 = arith.constant 0 : index
    %c0_0 = arith.constant 0 : index
    %0 = vector.load %arg1[%c0, %c0_0] : memref<10x128xf32, #tpu.memory_space<vmem>>, vector<10x128xf32>
    %1 = arith.truncf %0 : vector<10x128xf32> to vector<10x128xbf16>
    %c0_1 = arith.constant 0 : index
    %c0_2 = arith.constant 0 : index
    %2 = vector.load %arg2[%c0_1, %c0_2] : memref<128x1024xbf16, #tpu.memory_space<vmem>>, vector<128x1024xbf16>
    %cst = arith.constant dense<0.000000e+00> : vector<10x1024xf32>
    %3 = tpu.matmul %1, %2, %cst {dimension_numbers = #tpu.dot_dimension_numbers<[1], [0], [0], [1], [0, 0, 1, 1], [], []>} : vector<10x128xbf16>, vector<128x1024xbf16>, vector<10x1024xf32> -> vector<10x1024xf32>
    %c0_3 = arith.constant 0 : index
    %c0_4 = arith.constant 0 : index
    %4 = vector.load %arg3[%c0_3, %c0_4] : memref<3x1024xf32, #tpu.memory_space<vmem>>, vector<1x1024xf32>
    %5 = vector.broadcast %4 : vector<1x1024xf32> to vector<10x1024xf32>
    %6 = arith.addf %3, %5 : vector<10x1024xf32>
    %c10_i32 = arith.constant 10 : i32
    %7 = arith.muli %arg0, %c10_i32 : i32
    %8 = tpu.iota {dimensions = array<i32: 0>} : vector<10x1xi32>
    %9 = vector.broadcast %7 : i32 to vector<10x1xi32>
    %10 = arith.addi %9, %8 : vector<10x1xi32>
    %c5_i32 = arith.constant 5 : i32
    %c0_i32 = arith.constant 0 : i32
    %11 = arith.cmpi eq, %c5_i32, %c0_i32 : i32
    %c1_i32 = arith.constant 1 : i32
    %12 = arith.select %11, %c1_i32, %c5_i32 : i32
    %13 = vector.broadcast %12 : i32 to vector<10x1xi32>
    %14 = arith.remsi %10, %13 : vector<10x1xi32>
    %c0_i32_5 = arith.constant 0 : i32
    %15 = vector.broadcast %c0_i32_5 : i32 to vector<10x1xi32>
    %16 = arith.cmpi ne, %14, %15 : vector<10x1xi32>
    %c0_i32_6 = arith.constant 0 : i32
    %17 = vector.broadcast %c0_i32_6 : i32 to vector<10x1xi32>
    %18 = arith.cmpi slt, %14, %17 : vector<10x1xi32>
    %c0_i32_7 = arith.constant 0 : i32
    %19 = arith.cmpi slt, %12, %c0_i32_7 : i32
    %20 = vector.broadcast %19 : i1 to vector<10x1xi1>
    %21 = vector.broadcast %20 : vector<10x1xi1> to vector<10x1xi1>
    %22 = arith.xori %18, %21 : vector<10x1xi1>
    %23 = arith.andi %22, %16 : vector<10x1xi1>
    %24 = vector.broadcast %12 : i32 to vector<10x1xi32>
    %25 = arith.addi %14, %24 : vector<10x1xi32>
    %26 = arith.select %23, %25, %14 : vector<10x1xi1>, vector<10x1xi32>
    %27 = vector.extract_strided_slice %6 {offsets = [0, 0], sizes = [10, 256], strides = [1, 1]} : vector<10x1024xf32> to vector<10x256xf32>
    %cst_8 = arith.constant dense<0.000000e+00> : vector<10xf32>
    %28 = vector.multi_reduction <add>, %27, %cst_8 [1] : vector<10x256xf32> to vector<10xf32>
    %29 = vector.shape_cast %28 : vector<10xf32> to vector<10x1xf32>
    %cst_9 = arith.constant 3.906250e-03 : f32
    %30 = vector.broadcast %cst_9 : f32 to vector<10x1xf32>
    %31 = arith.mulf %29, %30 : vector<10x1xf32>
    %32 = arith.mulf %27, %27 : vector<10x256xf32>
    %cst_10 = arith.constant dense<0.000000e+00> : vector<10xf32>
    %33 = vector.multi_reduction <add>, %32, %cst_10 [1] : vector<10x256xf32> to vector<10xf32>
    %34 = vector.shape_cast %33 : vector<10xf32> to vector<10x1xf32>
    %cst_11 = arith.constant 3.906250e-03 : f32
    %35 = vector.broadcast %cst_11 : f32 to vector<10x1xf32>
    %36 = arith.mulf %34, %35 : vector<10x1xf32>
    %37 = arith.mulf %31, %31 : vector<10x1xf32>
    %38 = arith.subf %36, %37 : vector<10x1xf32>
    %cst_12 = arith.constant 0.000000e+00 : f32
    %39 = vector.broadcast %cst_12 : f32 to vector<10x1xf32>
    %40 = arith.maximumf %38, %39 : vector<10x1xf32>
    %cst_13 = arith.constant 9.99999974E-6 : f32
    %41 = vector.broadcast %cst_13 : f32 to vector<10x1xf32>
    %42 = arith.addf %40, %41 : vector<10x1xf32>
    %43 = math.rsqrt %42 : vector<10x1xf32>
    %44 = vector.broadcast %31 : vector<10x1xf32> to vector<10x256xf32>
    %45 = arith.subf %27, %44 : vector<10x256xf32>
    %46 = vector.broadcast %43 : vector<10x1xf32> to vector<10x256xf32>
    %47 = arith.mulf %45, %46 : vector<10x256xf32>
    %c1 = arith.constant 1 : index
    %c0_14 = arith.constant 0 : index
    %48 = vector.load %arg3[%c1, %c0_14] : memref<3x1024xf32, #tpu.memory_space<vmem>>, vector<1x256xf32>
    %49 = vector.broadcast %48 : vector<1x256xf32> to vector<10x256xf32>
    %50 = arith.mulf %47, %49 : vector<10x256xf32>
    %c2 = arith.constant 2 : index
    %c0_15 = arith.constant 0 : index
    %51 = vector.load %arg3[%c2, %c0_15] : memref<3x1024xf32, #tpu.memory_space<vmem>>, vector<1x256xf32>
    %52 = vector.broadcast %51 : vector<1x256xf32> to vector<10x256xf32>
    %53 = arith.addf %50, %52 : vector<10x256xf32>
    %c0_i32_16 = arith.constant 0 : i32
    %54 = vector.broadcast %c0_i32_16 : i32 to vector<10x1xi32>
    %55 = arith.cmpi eq, %26, %54 : vector<10x1xi32>
    %c0_17 = arith.constant 0 : index
    %c0_18 = arith.constant 0 : index
    %56 = vector.load %arg4[%c0_17, %c0_18] : memref<1x1024xf32, #tpu.memory_space<vmem>>, vector<1x256xf32>
    %57 = vector.shape_cast %55 : vector<10x1xi1> to vector<10x1xi1>
    %58 = vector.broadcast %57 : vector<10x1xi1> to vector<10x256xi1>
    %59 = vector.shape_cast %56 : vector<1x256xf32> to vector<1x256xf32>
    %60 = vector.broadcast %59 : vector<1x256xf32> to vector<10x256xf32>
    %61 = arith.select %58, %60, %53 : vector<10x256xi1>, vector<10x256xf32>
    %c0_19 = arith.constant 0 : index
    %c0_20 = arith.constant 0 : index
    %62 = vector.load %arg5[%c0_19, %c0_20] : memref<10x1024xf32, #tpu.memory_space<vmem>>, vector<10x256xf32>
    tpu.vector_store %arg5[%c0_19, %c0_20], %61 {strides = array<i32>} : memref<10x1024xf32, #tpu.memory_space<vmem>>, vector<10x256xf32>,
    %63 = vector.extract_strided_slice %6 {offsets = [0, 256], sizes = [10, 256], strides = [1, 1]} : vector<10x1024xf32> to vector<10x256xf32>
    %cst_21 = arith.constant dense<0.000000e+00> : vector<10xf32>
    %64 = vector.multi_reduction <add>, %63, %cst_21 [1] : vector<10x256xf32> to vector<10xf32>
    %65 = vector.shape_cast %64 : vector<10xf32> to vector<10x1xf32>
    %cst_22 = arith.constant 3.906250e-03 : f32
    %66 = vector.broadcast %cst_22 : f32 to vector<10x1xf32>
    %67 = arith.mulf %65, %66 : vector<10x1xf32>
    %68 = arith.mulf %63, %63 : vector<10x256xf32>
    %cst_23 = arith.constant dense<0.000000e+00> : vector<10xf32>
    %69 = vector.multi_reduction <add>, %68, %cst_23 [1] : vector<10x256xf32> to vector<10xf32>
    %70 = vector.shape_cast %69 : vector<10xf32> to vector<10x1xf32>
    %cst_24 = arith.constant 3.906250e-03 : f32
    %71 = vector.broadcast %cst_24 : f32 to vector<10x1xf32>
    %72 = arith.mulf %70, %71 : vector<10x1xf32>
    %73 = arith.mulf %67, %67 : vector<10x1xf32>
    %74 = arith.subf %72, %73 : vector<10x1xf32>
    %cst_25 = arith.constant 0.000000e+00 : f32
    %75 = vector.broadcast %cst_25 : f32 to vector<10x1xf32>
    %76 = arith.maximumf %74, %75 : vector<10x1xf32>
    %cst_26 = arith.constant 9.99999974E-6 : f32
    %77 = vector.broadcast %cst_26 : f32 to vector<10x1xf32>
    %78 = arith.addf %76, %77 : vector<10x1xf32>
    %79 = math.rsqrt %78 : vector<10x1xf32>
    %80 = vector.broadcast %67 : vector<10x1xf32> to vector<10x256xf32>
    %81 = arith.subf %63, %80 : vector<10x256xf32>
    %82 = vector.broadcast %79 : vector<10x1xf32> to vector<10x256xf32>
    %83 = arith.mulf %81, %82 : vector<10x256xf32>
    %c1_27 = arith.constant 1 : index
    %c256 = arith.constant 256 : index
    %84 = vector.load %arg3[%c1_27, %c256] : memref<3x1024xf32, #tpu.memory_space<vmem>>, vector<1x256xf32>
    %85 = vector.broadcast %84 : vector<1x256xf32> to vector<10x256xf32>
    %86 = arith.mulf %83, %85 : vector<10x256xf32>
    %c2_28 = arith.constant 2 : index
    %c256_29 = arith.constant 256 : index
    %87 = vector.load %arg3[%c2_28, %c256_29] : memref<3x1024xf32, #tpu.memory_space<vmem>>, vector<1x256xf32>
    %88 = vector.broadcast %87 : vector<1x256xf32> to vector<10x256xf32>
    %89 = arith.addf %86, %88 : vector<10x256xf32>
    %c0_i32_30 = arith.constant 0 : i32
    %90 = vector.broadcast %c0_i32_30 : i32 to vector<10x1xi32>
    %91 = arith.cmpi eq, %26, %90 : vector<10x1xi32>
    %c0_31 = arith.constant 0 : index
    %c256_32 = arith.constant 256 : index
    %92 = vector.load %arg4[%c0_31, %c256_32] : memref<1x1024xf32, #tpu.memory_space<vmem>>, vector<1x256xf32>
    %93 = vector.shape_cast %91 : vector<10x1xi1> to vector<10x1xi1>
    %94 = vector.broadcast %93 : vector<10x1xi1> to vector<10x256xi1>
    %95 = vector.shape_cast %92 : vector<1x256xf32> to vector<1x256xf32>
    %96 = vector.broadcast %95 : vector<1x256xf32> to vector<10x256xf32>
    %97 = arith.select %94, %96, %89 : vector<10x256xi1>, vector<10x256xf32>
    %c0_33 = arith.constant 0 : index
    %c256_34 = arith.constant 256 : index
    %98 = vector.load %arg5[%c0_33, %c256_34] : memref<10x1024xf32, #tpu.memory_space<vmem>>, vector<10x256xf32>
    tpu.vector_store %arg5[%c0_33, %c256_34], %97 {strides = array<i32>} : memref<10x1024xf32, #tpu.memory_space<vmem>>, vector<10x256xf32>,
    %99 = vector.extract_strided_slice %6 {offsets = [0, 512], sizes = [10, 256], strides = [1, 1]} : vector<10x1024xf32> to vector<10x256xf32>
    %cst_35 = arith.constant dense<0.000000e+00> : vector<10xf32>
    %100 = vector.multi_reduction <add>, %99, %cst_35 [1] : vector<10x256xf32> to vector<10xf32>
    %101 = vector.shape_cast %100 : vector<10xf32> to vector<10x1xf32>
    %cst_36 = arith.constant 3.906250e-03 : f32
    %102 = vector.broadcast %cst_36 : f32 to vector<10x1xf32>
    %103 = arith.mulf %101, %102 : vector<10x1xf32>
    %104 = arith.mulf %99, %99 : vector<10x256xf32>
    %cst_37 = arith.constant dense<0.000000e+00> : vector<10xf32>
    %105 = vector.multi_reduction <add>, %104, %cst_37 [1] : vector<10x256xf32> to vector<10xf32>
    %106 = vector.shape_cast %105 : vector<10xf32> to vector<10x1xf32>
    %cst_38 = arith.constant 3.906250e-03 : f32
    %107 = vector.broadcast %cst_38 : f32 to vector<10x1xf32>
    %108 = arith.mulf %106, %107 : vector<10x1xf32>
    %109 = arith.mulf %103, %103 : vector<10x1xf32>
    %110 = arith.subf %108, %109 : vector<10x1xf32>
    %cst_39 = arith.constant 0.000000e+00 : f32
    %111 = vector.broadcast %cst_39 : f32 to vector<10x1xf32>
    %112 = arith.maximumf %110, %111 : vector<10x1xf32>
    %cst_40 = arith.constant 9.99999974E-6 : f32
    %113 = vector.broadcast %cst_40 : f32 to vector<10x1xf32>
    %114 = arith.addf %112, %113 : vector<10x1xf32>
    %115 = math.rsqrt %114 : vector<10x1xf32>
    %116 = vector.broadcast %103 : vector<10x1xf32> to vector<10x256xf32>
    %117 = arith.subf %99, %116 : vector<10x256xf32>
    %118 = vector.broadcast %115 : vector<10x1xf32> to vector<10x256xf32>
    %119 = arith.mulf %117, %118 : vector<10x256xf32>
    %c1_41 = arith.constant 1 : index
    %c512 = arith.constant 512 : index
    %120 = vector.load %arg3[%c1_41, %c512] : memref<3x1024xf32, #tpu.memory_space<vmem>>, vector<1x256xf32>
    %121 = vector.broadcast %120 : vector<1x256xf32> to vector<10x256xf32>
    %122 = arith.mulf %119, %121 : vector<10x256xf32>
    %c2_42 = arith.constant 2 : index
    %c512_43 = arith.constant 512 : index
    %123 = vector.load %arg3[%c2_42, %c512_43] : memref<3x1024xf32, #tpu.memory_space<vmem>>, vector<1x256xf32>
    %124 = vector.broadcast %123 : vector<1x256xf32> to vector<10x256xf32>
    %125 = arith.addf %122, %124 : vector<10x256xf32>
    %c0_i32_44 = arith.constant 0 : i32
    %126 = vector.broadcast %c0_i32_44 : i32 to vector<10x1xi32>
    %127 = arith.cmpi eq, %26, %126 : vector<10x1xi32>
    %c0_45 = arith.constant 0 : index
    %c512_46 = arith.constant 512 : index
    %128 = vector.load %arg4[%c0_45, %c512_46] : memref<1x1024xf32, #tpu.memory_space<vmem>>, vector<1x256xf32>
    %129 = vector.shape_cast %127 : vector<10x1xi1> to vector<10x1xi1>
    %130 = vector.broadcast %129 : vector<10x1xi1> to vector<10x256xi1>
    %131 = vector.shape_cast %128 : vector<1x256xf32> to vector<1x256xf32>
    %132 = vector.broadcast %131 : vector<1x256xf32> to vector<10x256xf32>
    %133 = arith.select %130, %132, %125 : vector<10x256xi1>, vector<10x256xf32>
    %c0_47 = arith.constant 0 : index
    %c512_48 = arith.constant 512 : index
    %134 = vector.load %arg5[%c0_47, %c512_48] : memref<10x1024xf32, #tpu.memory_space<vmem>>, vector<10x256xf32>
    tpu.vector_store %arg5[%c0_47, %c512_48], %133 {strides = array<i32>} : memref<10x1024xf32, #tpu.memory_space<vmem>>, vector<10x256xf32>,
    %135 = vector.extract_strided_slice %6 {offsets = [0, 768], sizes = [10, 256], strides = [1, 1]} : vector<10x1024xf32> to vector<10x256xf32>
    %cst_49 = arith.constant dense<0.000000e+00> : vector<10xf32>
    %136 = vector.multi_reduction <add>, %135, %cst_49 [1] : vector<10x256xf32> to vector<10xf32>
    %137 = vector.shape_cast %136 : vector<10xf32> to vector<10x1xf32>
    %cst_50 = arith.constant 3.906250e-03 : f32
    %138 = vector.broadcast %cst_50 : f32 to vector<10x1xf32>
    %139 = arith.mulf %137, %138 : vector<10x1xf32>
    %140 = arith.mulf %135, %135 : vector<10x256xf32>
    %cst_51 = arith.constant dense<0.000000e+00> : vector<10xf32>
    %141 = vector.multi_reduction <add>, %140, %cst_51 [1] : vector<10x256xf32> to vector<10xf32>
    %142 = vector.shape_cast %141 : vector<10xf32> to vector<10x1xf32>
    %cst_52 = arith.constant 3.906250e-03 : f32
    %143 = vector.broadcast %cst_52 : f32 to vector<10x1xf32>
    %144 = arith.mulf %142, %143 : vector<10x1xf32>
    %145 = arith.mulf %139, %139 : vector<10x1xf32>
    %146 = arith.subf %144, %145 : vector<10x1xf32>
    %cst_53 = arith.constant 0.000000e+00 : f32
    %147 = vector.broadcast %cst_53 : f32 to vector<10x1xf32>
    %148 = arith.maximumf %146, %147 : vector<10x1xf32>
    %cst_54 = arith.constant 9.99999974E-6 : f32
    %149 = vector.broadcast %cst_54 : f32 to vector<10x1xf32>
    %150 = arith.addf %148, %149 : vector<10x1xf32>
    %151 = math.rsqrt %150 : vector<10x1xf32>
    %152 = vector.broadcast %139 : vector<10x1xf32> to vector<10x256xf32>
    %153 = arith.subf %135, %152 : vector<10x256xf32>
    %154 = vector.broadcast %151 : vector<10x1xf32> to vector<10x256xf32>
    %155 = arith.mulf %153, %154 : vector<10x256xf32>
    %c1_55 = arith.constant 1 : index
    %c768 = arith.constant 768 : index
    %156 = vector.load %arg3[%c1_55, %c768] : memref<3x1024xf32, #tpu.memory_space<vmem>>, vector<1x256xf32>
    %157 = vector.broadcast %156 : vector<1x256xf32> to vector<10x256xf32>
    %158 = arith.mulf %155, %157 : vector<10x256xf32>
    %c2_56 = arith.constant 2 : index
    %c768_57 = arith.constant 768 : index
    %159 = vector.load %arg3[%c2_56, %c768_57] : memref<3x1024xf32, #tpu.memory_space<vmem>>, vector<1x256xf32>
    %160 = vector.broadcast %159 : vector<1x256xf32> to vector<10x256xf32>
    %161 = arith.addf %158, %160 : vector<10x256xf32>
    %c0_i32_58 = arith.constant 0 : i32
    %162 = vector.broadcast %c0_i32_58 : i32 to vector<10x1xi32>
    %163 = arith.cmpi eq, %26, %162 : vector<10x1xi32>
    %c0_59 = arith.constant 0 : index
    %c768_60 = arith.constant 768 : index
    %164 = vector.load %arg4[%c0_59, %c768_60] : memref<1x1024xf32, #tpu.memory_space<vmem>>, vector<1x256xf32>
    %165 = vector.shape_cast %163 : vector<10x1xi1> to vector<10x1xi1>
    %166 = vector.broadcast %165 : vector<10x1xi1> to vector<10x256xi1>
    %167 = vector.shape_cast %164 : vector<1x256xf32> to vector<1x256xf32>
    %168 = vector.broadcast %167 : vector<1x256xf32> to vector<10x256xf32>
    %169 = arith.select %166, %168, %161 : vector<10x256xi1>, vector<10x256xf32>
    %c0_61 = arith.constant 0 : index
    %c768_62 = arith.constant 768 : index
    %170 = vector.load %arg5[%c0_61, %c768_62] : memref<10x1024xf32, #tpu.memory_space<vmem>>, vector<10x256xf32>
    tpu.vector_store %arg5[%c0_61, %c768_62], %169 {strides = array<i32>} : memref<10x1024xf32, #tpu.memory_space<vmem>>, vector<10x256xf32>,
    return
  }
  func.func @transform_0(%arg0: i32) -> (i32, i32) {
    %c0_i32 = arith.constant 0 : i32
    %c0_i32_0 = arith.constant 0 : i32
    return %arg0, %c0_i32 : i32, i32
  }
  func.func @transform_1(%arg0: i32) -> (i32, i32) {
    %c0_i32 = arith.constant 0 : i32
    %c0_i32_0 = arith.constant 0 : i32
    %c0_i32_1 = arith.constant 0 : i32
    return %c0_i32, %c0_i32_0 : i32, i32
  }
  func.func @transform_2(%arg0: i32) -> (i32, i32) {
    %c0_i32 = arith.constant 0 : i32
    %c0_i32_0 = arith.constant 0 : i32
    %c0_i32_1 = arith.constant 0 : i32
    return %c0_i32, %c0_i32_0 : i32, i32
  }
  func.func @transform_3(%arg0: i32) -> (i32, i32) {
    %c0_i32 = arith.constant 0 : i32
    %c0_i32_0 = arith.constant 0 : i32
    %c0_i32_1 = arith.constant 0 : i32
    return %c0_i32, %c0_i32_0 : i32, i32
  }
  func.func @transform_4(%arg0: i32) -> (i32, i32) {
    %c0_i32 = arith.constant 0 : i32
    %c0_i32_0 = arith.constant 0 : i32
    return %arg0, %c0_i32 : i32, i32
  }
}

module attributes {stable_mosaic.version = 11 : i64} {
  func.func @_proj_ln_dummy_kernel(%arg0: i32, %arg1: memref<10x128xf32, #tpu.memory_space<vmem>>, %arg2: memref<128x1024xbf16, #tpu.memory_space<vmem>>, %arg3: memref<3x1024xf32, #tpu.memory_space<vmem>>, %arg4: memref<1x1024xf32, #tpu.memory_space<vmem>>, %arg5: memref<10x1024xf32, #tpu.memory_space<vmem>>) attributes {dimension_semantics = [#tpu.dimension_semantics<parallel>], iteration_bounds = array<i64: 1>, scalar_prefetch = 0 : i64, scratch_operands = 0 : i64, tpu.core_type = #tpu.core_type<tc>, window_params = [{transform_indices = @transform_0, window_bounds = array<i64: 10, 128>}, {pipeline_mode = #tpu.pipeline_mode<synchronous>, transform_indices = @transform_1, window_bounds = array<i64: 128, 1024>}, {pipeline_mode = #tpu.pipeline_mode<synchronous>, transform_indices = @transform_2, window_bounds = array<i64: 3, 1024>}, {pipeline_mode = #tpu.pipeline_mode<synchronous>, transform_indices = @transform_3, window_bounds = array<i64: 1, 1024>}, {transform_indices = @transform_4, window_bounds = array<i64: 10, 1024>}]} {
    %c0 = arith.constant 0 : index
    %c0_0 = arith.constant 0 : index
    %0 = vector.load %arg1[%c0, %c0_0] : memref<10x128xf32, #tpu.memory_space<vmem>>, vector<10x128xf32>
    %1 = arith.truncf %0 : vector<10x128xf32> to vector<10x128xbf16>
    %c0_1 = arith.constant 0 : index
    %c0_2 = arith.constant 0 : index
    %2 = vector.load %arg2[%c0_1, %c0_2] : memref<128x1024xbf16, #tpu.memory_space<vmem>>, vector<128x1024xbf16>
    %cst = arith.constant dense<0.000000e+00> : vector<10x1024xf32>
    %3 = tpu.matmul %1, %2, %cst {dimension_numbers = #tpu.dot_dimension_numbers<[1], [0], [0], [1], [0, 0, 1, 1], [], []>} : vector<10x128xbf16>, vector<128x1024xbf16>, vector<10x1024xf32> -> vector<10x1024xf32>
    %c0_3 = arith.constant 0 : index
    %c0_4 = arith.constant 0 : index
    %4 = vector.load %arg3[%c0_3, %c0_4] : memref<3x1024xf32, #tpu.memory_space<vmem>>, vector<1x1024xf32>
    %5 = vector.broadcast %4 : vector<1x1024xf32> to vector<10x1024xf32>
    %6 = arith.addf %3, %5 : vector<10x1024xf32>
    %c10_i32 = arith.constant 10 : i32
    %7 = arith.muli %arg0, %c10_i32 : i32
    %8 = tpu.iota {dimensions = array<i32: 0>} : vector<10x1xi32>
    %9 = vector.broadcast %7 : i32 to vector<10x1xi32>
    %10 = arith.addi %9, %8 : vector<10x1xi32>
    %c5_i32 = arith.constant 5 : i32
    %c0_i32 = arith.constant 0 : i32
    %11 = arith.cmpi eq, %c5_i32, %c0_i32 : i32
    %c1_i32 = arith.constant 1 : i32
    %12 = arith.select %11, %c1_i32, %c5_i32 : i32
    %13 = vector.broadcast %12 : i32 to vector<10x1xi32>
    %14 = arith.remsi %10, %13 : vector<10x1xi32>
    %c0_i32_5 = arith.constant 0 : i32
    %15 = vector.broadcast %c0_i32_5 : i32 to vector<10x1xi32>
    %16 = arith.cmpi ne, %14, %15 : vector<10x1xi32>
    %c0_i32_6 = arith.constant 0 : i32
    %17 = vector.broadcast %c0_i32_6 : i32 to vector<10x1xi32>
    %18 = arith.cmpi slt, %14, %17 : vector<10x1xi32>
    %c0_i32_7 = arith.constant 0 : i32
    %19 = arith.cmpi slt, %12, %c0_i32_7 : i32
    %20 = vector.broadcast %19 : i1 to vector<10x1xi1>
    %21 = vector.broadcast %20 : vector<10x1xi1> to vector<10x1xi1>
    %22 = arith.xori %18, %21 : vector<10x1xi1>
    %23 = arith.andi %22, %16 : vector<10x1xi1>
    %24 = vector.broadcast %12 : i32 to vector<10x1xi32>
    %25 = arith.addi %14, %24 : vector<10x1xi32>
    %26 = arith.select %23, %25, %14 : vector<10x1xi1>, vector<10x1xi32>
    %27 = vector.extract_strided_slice %6 {offsets = [0, 0], sizes = [10, 256], strides = [1, 1]} : vector<10x1024xf32> to vector<10x256xf32>
    %cst_8 = arith.constant dense<0.000000e+00> : vector<10xf32>
    %28 = vector.multi_reduction <add>, %27, %cst_8 [1] : vector<10x256xf32> to vector<10xf32>
    %29 = vector.shape_cast %28 : vector<10xf32> to vector<10x1xf32>
    %cst_9 = arith.constant 3.906250e-03 : f32
    %30 = vector.broadcast %cst_9 : f32 to vector<10x1xf32>
    %31 = arith.mulf %29, %30 : vector<10x1xf32>
    %32 = arith.mulf %27, %27 : vector<10x256xf32>
    %cst_10 = arith.constant dense<0.000000e+00> : vector<10xf32>
    %33 = vector.multi_reduction <add>, %32, %cst_10 [1] : vector<10x256xf32> to vector<10xf32>
    %34 = vector.shape_cast %33 : vector<10xf32> to vector<10x1xf32>
    %cst_11 = arith.constant 3.906250e-03 : f32
    %35 = vector.broadcast %cst_11 : f32 to vector<10x1xf32>
    %36 = arith.mulf %34, %35 : vector<10x1xf32>
    %37 = arith.mulf %31, %31 : vector<10x1xf32>
    %38 = arith.subf %36, %37 : vector<10x1xf32>
    %cst_12 = arith.constant 0.000000e+00 : f32
    %39 = vector.broadcast %cst_12 : f32 to vector<10x1xf32>
    %40 = arith.maximumf %38, %39 : vector<10x1xf32>
    %cst_13 = arith.constant 9.99999974E-6 : f32
    %41 = vector.broadcast %cst_13 : f32 to vector<10x1xf32>
    %42 = arith.addf %40, %41 : vector<10x1xf32>
    %43 = math.rsqrt %42 : vector<10x1xf32>
    %44 = vector.broadcast %31 : vector<10x1xf32> to vector<10x256xf32>
    %45 = arith.subf %27, %44 : vector<10x256xf32>
    %46 = vector.broadcast %43 : vector<10x1xf32> to vector<10x256xf32>
    %47 = arith.mulf %45, %46 : vector<10x256xf32>
    %c1 = arith.constant 1 : index
    %c0_14 = arith.constant 0 : index
    %48 = vector.load %arg3[%c1, %c0_14] : memref<3x1024xf32, #tpu.memory_space<vmem>>, vector<1x256xf32>
    %49 = vector.broadcast %48 : vector<1x256xf32> to vector<10x256xf32>
    %50 = arith.mulf %47, %49 : vector<10x256xf32>
    %c2 = arith.constant 2 : index
    %c0_15 = arith.constant 0 : index
    %51 = vector.load %arg3[%c2, %c0_15] : memref<3x1024xf32, #tpu.memory_space<vmem>>, vector<1x256xf32>
    %52 = vector.broadcast %51 : vector<1x256xf32> to vector<10x256xf32>
    %53 = arith.addf %50, %52 : vector<10x256xf32>
    %c0_i32_16 = arith.constant 0 : i32
    %54 = vector.broadcast %c0_i32_16 : i32 to vector<10x1xi32>
    %55 = arith.cmpi eq, %26, %54 : vector<10x1xi32>
    %c0_17 = arith.constant 0 : index
    %c0_18 = arith.constant 0 : index
    %56 = vector.load %arg4[%c0_17, %c0_18] : memref<1x1024xf32, #tpu.memory_space<vmem>>, vector<1x256xf32>
    %57 = vector.shape_cast %55 : vector<10x1xi1> to vector<10x1xi1>
    %58 = vector.broadcast %57 : vector<10x1xi1> to vector<10x256xi1>
    %59 = vector.shape_cast %56 : vector<1x256xf32> to vector<1x256xf32>
    %60 = vector.broadcast %59 : vector<1x256xf32> to vector<10x256xf32>
    %61 = arith.select %58, %60, %53 : vector<10x256xi1>, vector<10x256xf32>
    %c0_19 = arith.constant 0 : index
    %c0_20 = arith.constant 0 : index
    %62 = vector.load %arg5[%c0_19, %c0_20] : memref<10x1024xf32, #tpu.memory_space<vmem>>, vector<10x256xf32>
    tpu.vector_store %arg5[%c0_19, %c0_20], %61 {strides = array<i32>} : memref<10x1024xf32, #tpu.memory_space<vmem>>, vector<10x256xf32>,
    %63 = vector.extract_strided_slice %6 {offsets = [0, 256], sizes = [10, 256], strides = [1, 1]} : vector<10x1024xf32> to vector<10x256xf32>
    %cst_21 = arith.constant dense<0.000000e+00> : vector<10xf32>
    %64 = vector.multi_reduction <add>, %63, %cst_21 [1] : vector<10x256xf32> to vector<10xf32>
    %65 = vector.shape_cast %64 : vector<10xf32> to vector<10x1xf32>
    %cst_22 = arith.constant 3.906250e-03 : f32
    %66 = vector.broadcast %cst_22 : f32 to vector<10x1xf32>
    %67 = arith.mulf %65, %66 : vector<10x1xf32>
    %68 = arith.mulf %63, %63 : vector<10x256xf32>
    %cst_23 = arith.constant dense<0.000000e+00> : vector<10xf32>
    %69 = vector.multi_reduction <add>, %68, %cst_23 [1] : vector<10x256xf32> to vector<10xf32>
    %70 = vector.shape_cast %69 : vector<10xf32> to vector<10x1xf32>
    %cst_24 = arith.constant 3.906250e-03 : f32
    %71 = vector.broadcast %cst_24 : f32 to vector<10x1xf32>
    %72 = arith.mulf %70, %71 : vector<10x1xf32>
    %73 = arith.mulf %67, %67 : vector<10x1xf32>
    %74 = arith.subf %72, %73 : vector<10x1xf32>
    %cst_25 = arith.constant 0.000000e+00 : f32
    %75 = vector.broadcast %cst_25 : f32 to vector<10x1xf32>
    %76 = arith.maximumf %74, %75 : vector<10x1xf32>
    %cst_26 = arith.constant 9.99999974E-6 : f32
    %77 = vector.broadcast %cst_26 : f32 to vector<10x1xf32>
    %78 = arith.addf %76, %77 : vector<10x1xf32>
    %79 = math.rsqrt %78 : vector<10x1xf32>
    %80 = vector.broadcast %67 : vector<10x1xf32> to vector<10x256xf32>
    %81 = arith.subf %63, %80 : vector<10x256xf32>
    %82 = vector.broadcast %79 : vector<10x1xf32> to vector<10x256xf32>
    %83 = arith.mulf %81, %82 : vector<10x256xf32>
    %c1_27 = arith.constant 1 : index
    %c256 = arith.constant 256 : index
    %84 = vector.load %arg3[%c1_27, %c256] : memref<3x1024xf32, #tpu.memory_space<vmem>>, vector<1x256xf32>
    %85 = vector.broadcast %84 : vector<1x256xf32> to vector<10x256xf32>
    %86 = arith.mulf %83, %85 : vector<10x256xf32>
    %c2_28 = arith.constant 2 : index
    %c256_29 = arith.constant 256 : index
    %87 = vector.load %arg3[%c2_28, %c256_29] : memref<3x1024xf32, #tpu.memory_space<vmem>>, vector<1x256xf32>
    %88 = vector.broadcast %87 : vector<1x256xf32> to vector<10x256xf32>
    %89 = arith.addf %86, %88 : vector<10x256xf32>
    %c0_i32_30 = arith.constant 0 : i32
    %90 = vector.broadcast %c0_i32_30 : i32 to vector<10x1xi32>
    %91 = arith.cmpi eq, %26, %90 : vector<10x1xi32>
    %c0_31 = arith.constant 0 : index
    %c256_32 = arith.constant 256 : index
    %92 = vector.load %arg4[%c0_31, %c256_32] : memref<1x1024xf32, #tpu.memory_space<vmem>>, vector<1x256xf32>
    %93 = vector.shape_cast %91 : vector<10x1xi1> to vector<10x1xi1>
    %94 = vector.broadcast %93 : vector<10x1xi1> to vector<10x256xi1>
    %95 = vector.shape_cast %92 : vector<1x256xf32> to vector<1x256xf32>
    %96 = vector.broadcast %95 : vector<1x256xf32> to vector<10x256xf32>
    %97 = arith.select %94, %96, %89 : vector<10x256xi1>, vector<10x256xf32>
    %c0_33 = arith.constant 0 : index
    %c256_34 = arith.constant 256 : index
    %98 = vector.load %arg5[%c0_33, %c256_34] : memref<10x1024xf32, #tpu.memory_space<vmem>>, vector<10x256xf32>
    tpu.vector_store %arg5[%c0_33, %c256_34], %97 {strides = array<i32>} : memref<10x1024xf32, #tpu.memory_space<vmem>>, vector<10x256xf32>,
    %99 = vector.extract_strided_slice %6 {offsets = [0, 512], sizes = [10, 256], strides = [1, 1]} : vector<10x1024xf32> to vector<10x256xf32>
    %cst_35 = arith.constant dense<0.000000e+00> : vector<10xf32>
    %100 = vector.multi_reduction <add>, %99, %cst_35 [1] : vector<10x256xf32> to vector<10xf32>
    %101 = vector.shape_cast %100 : vector<10xf32> to vector<10x1xf32>
    %cst_36 = arith.constant 3.906250e-03 : f32
    %102 = vector.broadcast %cst_36 : f32 to vector<10x1xf32>
    %103 = arith.mulf %101, %102 : vector<10x1xf32>
    %104 = arith.mulf %99, %99 : vector<10x256xf32>
    %cst_37 = arith.constant dense<0.000000e+00> : vector<10xf32>
    %105 = vector.multi_reduction <add>, %104, %cst_37 [1] : vector<10x256xf32> to vector<10xf32>
    %106 = vector.shape_cast %105 : vector<10xf32> to vector<10x1xf32>
    %cst_38 = arith.constant 3.906250e-03 : f32
    %107 = vector.broadcast %cst_38 : f32 to vector<10x1xf32>
    %108 = arith.mulf %106, %107 : vector<10x1xf32>
    %109 = arith.mulf %103, %103 : vector<10x1xf32>
    %110 = arith.subf %108, %109 : vector<10x1xf32>
    %cst_39 = arith.constant 0.000000e+00 : f32
    %111 = vector.broadcast %cst_39 : f32 to vector<10x1xf32>
    %112 = arith.maximumf %110, %111 : vector<10x1xf32>
    %cst_40 = arith.constant 9.99999974E-6 : f32
    %113 = vector.broadcast %cst_40 : f32 to vector<10x1xf32>
    %114 = arith.addf %112, %113 : vector<10x1xf32>
    %115 = math.rsqrt %114 : vector<10x1xf32>
    %116 = vector.broadcast %103 : vector<10x1xf32> to vector<10x256xf32>
    %117 = arith.subf %99, %116 : vector<10x256xf32>
    %118 = vector.broadcast %115 : vector<10x1xf32> to vector<10x256xf32>
    %119 = arith.mulf %117, %118 : vector<10x256xf32>
    %c1_41 = arith.constant 1 : index
    %c512 = arith.constant 512 : index
    %120 = vector.load %arg3[%c1_41, %c512] : memref<3x1024xf32, #tpu.memory_space<vmem>>, vector<1x256xf32>
    %121 = vector.broadcast %120 : vector<1x256xf32> to vector<10x256xf32>
    %122 = arith.mulf %119, %121 : vector<10x256xf32>
    %c2_42 = arith.constant 2 : index
    %c512_43 = arith.constant 512 : index
    %123 = vector.load %arg3[%c2_42, %c512_43] : memref<3x1024xf32, #tpu.memory_space<vmem>>, vector<1x256xf32>
    %124 = vector.broadcast %123 : vector<1x256xf32> to vector<10x256xf32>
    %125 = arith.addf %122, %124 : vector<10x256xf32>
    %c0_i32_44 = arith.constant 0 : i32
    %126 = vector.broadcast %c0_i32_44 : i32 to vector<10x1xi32>
    %127 = arith.cmpi eq, %26, %126 : vector<10x1xi32>
    %c0_45 = arith.constant 0 : index
    %c512_46 = arith.constant 512 : index
    %128 = vector.load %arg4[%c0_45, %c512_46] : memref<1x1024xf32, #tpu.memory_space<vmem>>, vector<1x256xf32>
    %129 = vector.shape_cast %127 : vector<10x1xi1> to vector<10x1xi1>
    %130 = vector.broadcast %129 : vector<10x1xi1> to vector<10x256xi1>
    %131 = vector.shape_cast %128 : vector<1x256xf32> to vector<1x256xf32>
    %132 = vector.broadcast %131 : vector<1x256xf32> to vector<10x256xf32>
    %133 = arith.select %130, %132, %125 : vector<10x256xi1>, vector<10x256xf32>
    %c0_47 = arith.constant 0 : index
    %c512_48 = arith.constant 512 : index
    %134 = vector.load %arg5[%c0_47, %c512_48] : memref<10x1024xf32, #tpu.memory_space<vmem>>, vector<10x256xf32>
    tpu.vector_store %arg5[%c0_47, %c512_48], %133 {strides = array<i32>} : memref<10x1024xf32, #tpu.memory_space<vmem>>, vector<10x256xf32>,
    %135 = vector.extract_strided_slice %6 {offsets = [0, 768], sizes = [10, 256], strides = [1, 1]} : vector<10x1024xf32> to vector<10x256xf32>
    %cst_49 = arith.constant dense<0.000000e+00> : vector<10xf32>
    %136 = vector.multi_reduction <add>, %135, %cst_49 [1] : vector<10x256xf32> to vector<10xf32>
    %137 = vector.shape_cast %136 : vector<10xf32> to vector<10x1xf32>
    %cst_50 = arith.constant 3.906250e-03 : f32
    %138 = vector.broadcast %cst_50 : f32 to vector<10x1xf32>
    %139 = arith.mulf %137, %138 : vector<10x1xf32>
    %140 = arith.mulf %135, %135 : vector<10x256xf32>
    %cst_51 = arith.constant dense<0.000000e+00> : vector<10xf32>
    %141 = vector.multi_reduction <add>, %140, %cst_51 [1] : vector<10x256xf32> to vector<10xf32>
    %142 = vector.shape_cast %141 : vector<10xf32> to vector<10x1xf32>
    %cst_52 = arith.constant 3.906250e-03 : f32
    %143 = vector.broadcast %cst_52 : f32 to vector<10x1xf32>
    %144 = arith.mulf %142, %143 : vector<10x1xf32>
    %145 = arith.mulf %139, %139 : vector<10x1xf32>
    %146 = arith.subf %144, %145 : vector<10x1xf32>
    %cst_53 = arith.constant 0.000000e+00 : f32
    %147 = vector.broadcast %cst_53 : f32 to vector<10x1xf32>
    %148 = arith.maximumf %146, %147 : vector<10x1xf32>
    %cst_54 = arith.constant 9.99999974E-6 : f32
    %149 = vector.broadcast %cst_54 : f32 to vector<10x1xf32>
    %150 = arith.addf %148, %149 : vector<10x1xf32>
    %151 = math.rsqrt %150 : vector<10x1xf32>
    %152 = vector.broadcast %139 : vector<10x1xf32> to vector<10x256xf32>
    %153 = arith.subf %135, %152 : vector<10x256xf32>
    %154 = vector.broadcast %151 : vector<10x1xf32> to vector<10x256xf32>
    %155 = arith.mulf %153, %154 : vector<10x256xf32>
    %c1_55 = arith.constant 1 : index
    %c768 = arith.constant 768 : index
    %156 = vector.load %arg3[%c1_55, %c768] : memref<3x1024xf32, #tpu.memory_space<vmem>>, vector<1x256xf32>
    %157 = vector.broadcast %156 : vector<1x256xf32> to vector<10x256xf32>
    %158 = arith.mulf %155, %157 : vector<10x256xf32>
    %c2_56 = arith.constant 2 : index
    %c768_57 = arith.constant 768 : index
    %159 = vector.load %arg3[%c2_56, %c768_57] : memref<3x1024xf32, #tpu.memory_space<vmem>>, vector<1x256xf32>
    %160 = vector.broadcast %159 : vector<1x256xf32> to vector<10x256xf32>
    %161 = arith.addf %158, %160 : vector<10x256xf32>
    %c0_i32_58 = arith.constant 0 : i32
    %162 = vector.broadcast %c0_i32_58 : i32 to vector<10x1xi32>
    %163 = arith.cmpi eq, %26, %162 : vector<10x1xi32>
    %c0_59 = arith.constant 0 : index
    %c768_60 = arith.constant 768 : index
    %164 = vector.load %arg4[%c0_59, %c768_60] : memref<1x1024xf32, #tpu.memory_space<vmem>>, vector<1x256xf32>
    %165 = vector.shape_cast %163 : vector<10x1xi1> to vector<10x1xi1>
    %166 = vector.broadcast %165 : vector<10x1xi1> to vector<10x256xi1>
    %167 = vector.shape_cast %164 : vector<1x256xf32> to vector<1x256xf32>
    %168 = vector.broadcast %167 : vector<1x256xf32> to vector<10x256xf32>
    %169 = arith.select %166, %168, %161 : vector<10x256xi1>, vector<10x256xf32>
    %c0_61 = arith.constant 0 : index
    %c768_62 = arith.constant 768 : index
    %170 = vector.load %arg5[%c0_61, %c768_62] : memref<10x1024xf32, #tpu.memory_space<vmem>>, vector<10x256xf32>
    tpu.vector_store %arg5[%c0_61, %c768_62], %169 {strides = array<i32>} : memref<10x1024xf32, #tpu.memory_space<vmem>>, vector<10x256xf32>,
    return
  }
  func.func @transform_0(%arg0: i32) -> (i32, i32) {
    %c0_i32 = arith.constant 0 : i32
    %c0_i32_0 = arith.constant 0 : i32
    return %arg0, %c0_i32 : i32, i32
  }
  func.func @transform_1(%arg0: i32) -> (i32, i32) {
    %c0_i32 = arith.constant 0 : i32
    %c0_i32_0 = arith.constant 0 : i32
    %c0_i32_1 = arith.constant 0 : i32
    return %c0_i32, %c0_i32_0 : i32, i32
  }
  func.func @transform_2(%arg0: i32) -> (i32, i32) {
    %c0_i32 = arith.constant 0 : i32
    %c0_i32_0 = arith.constant 0 : i32
    %c0_i32_1 = arith.constant 0 : i32
    return %c0_i32, %c0_i32_0 : i32, i32
  }
  func.func @transform_3(%arg0: i32) -> (i32, i32) {
    %c0_i32 = arith.constant 0 : i32
    %c0_i32_0 = arith.constant 0 : i32
    %c0_i32_1 = arith.constant 0 : i32
    return %c0_i32, %c0_i32_0 : i32, i32
  }
  func.func @transform_4(%arg0: i32) -> (i32, i32) {
    %c0_i32 = arith.constant 0 : i32
    %c0_i32_0 = arith.constant 0 : i32
    return %arg0, %c0_i32 : i32, i32
  }
}

</mosaic_0001>

<bundles_post_ra>
// kernel: tpu_custom_call.1
= control target key start
LH: loop header
LB: loop body
LE: loop exit
PB: predicated region body
PF: predicated region fallthrough
CT: control target
= control target key end

     0   :  { %9 = vsyncpa [#allocation3], 0  ;;  %s1996_s0 = inlined_call_operand.hbm [shape: f32[10,128], index: 0, kind: input, shape index: {}]   ;;  %s1997_s1 = inlined_call_operand.hbm [shape: bf16[128,1024], index: 1, kind: input, shape index: {}]   ;;  %s1998_s2 = inlined_call_operand.hbm [shape: f32[3,1024], index: 2, kind: input, shape index: {}]   ;;  %s1999_s3 = inlined_call_operand.hbm [shape: f32[1,1024], index: 3, kind: input, shape index: {}]   ;;  %s2000_s4 = inlined_call_operand.hbm [shape: f32[10,1024], index: 4, kind: output, shape index: {}]  }
   0x1   :  { %10 = vsyncpa [#allocation6], 0 }
   0x2   :  { %11 = vsyncpa [#allocation9], 0  ;;  %s30_s17 = sshll.u32 %s1997_s1, 4  ;;  %s31_s17 = int_to_ptr.hbm [resolvable:$true] %s30_s17 }
   0x3   :  { %12 = vsyncpa [#allocation4], 0  ;;  %s1557_s18 = smov [#allocation5]   ;;  %s17_s22 = sshll.u32 %s1996_s0, 4  ;;  %s18_s22 = int_to_ptr.hbm [resolvable:$true] %s17_s22 }
   0x4   :  { %s32_s19 = sshll.u32 %s1557_s18, 4  ;;  %s1558_s23 = smov 512   ;;  %s33_s19 = int_to_ptr.vmem [resolvable:$true] %s32_s19 }
   0x5   :  { %s1559_s24 = smov 32   ;;  %s1560_s25 = smov [#allocation2]  }
   0x6   :  { %38 = dma.hbm_to_vmem [thread:$0]  %s31_s17, 8192, %s33_s19, [#allocation6], %s1558_s23, %s1558_s23, %s1559_s24  }
   0x7   :  { %s19_s26 = sshll.u32 %s1560_s25, 4  ;;  %s1561_s27 = smov 128   ;;  %s20_s26 = int_to_ptr.vmem [resolvable:$true] %s19_s26 }
   0x8   :  { %s1562_s28 = smov 8   ;;  %s44_s30 = sshll.u32 %s1998_s2, 4  ;;  %s45_s30 = int_to_ptr.hbm [resolvable:$true] %s44_s30 }
   0x9   :  { %25 = dma.hbm_to_vmem [thread:$0]  %s18_s22, 256, %s20_s26, [#allocation3], %s1561_s27, %s1561_s27, %s1562_s28  }
   0xa   :  { %s1563_s5 = smov [#allocation7]   ;;  %s55_s8 = sshll.u32 %s1999_s3, 4  ;;  %s56_s8 = int_to_ptr.hbm [resolvable:$true] %s55_s8 }
   0xb   :  { %s46_s6 = sshll.u32 %s1563_s5, 4  ;;  %s1564_s9 = smov [#allocation8]   ;;  %s47_s6 = int_to_ptr.vmem [resolvable:$true] %s46_s6 }
   0xc   :  { %49 = dma.hbm_to_vmem [thread:$0]  %s45_s30, 512, %s47_s6, [#allocation6]  }
   0xd   :  { %s57_s10 = sshll.u32 %s1564_s9, 4  ;;  %s58_s10 = int_to_ptr.vmem [resolvable:$true] %s57_s10 }
   0xe   :  { %60 = dma.hbm_to_vmem [thread:$0]  %s56_s8, 128, %s58_s10, [#allocation9]  }
   0xf   :  { %1549 = dma.done.wait [#allocation3], 256  }
  0x10   :  { %1550 = vsyncadd [#allocation3], 4294967040 }
  0x11   :  { %1551 = dma.done.wait [#allocation6], 8704  }
  0x12   :  { %1552 = vsyncadd [#allocation6], 4294958592 }
  0x13   :  { %1553 = dma.done.wait [#allocation9], 128  }
  0x14   :  { %1554 = vsyncadd [#allocation9], 4294967168  ;;  %v1307_v0 = vld [vmem:[#allocation5 + $0x1c0] sm:$0xf]  ;;  %v1393_v2 = vld [vmem:[#allocation5 + $0x1c4] sm:$0xf] }
  0x15   :  { %v1397_v1 = vld [vmem:[#allocation5 + $0x1dc] sm:$0xf0]  ;;  %v1309_v4 = vld [vmem:[#allocation5 + $0x1e0] sm:$0xf0]  ;;  %v1315_v5 = vld [vmem:[#allocation5 + $0x1c8] sm:$0xf] }
  0x16   :  { %v1308_v3 = vor.u32 %v1397_v1, %v1307_v0  ;;  %v1398_v6 = vld [vmem:[#allocation5 + $0x1e4] sm:$0xf0]  ;;  %v1312_v7 = vor.u32 %v1393_v2, %v1309_v4  ;;  %v1394_v9 = vld [vmem:[#allocation5 + $0x1cc] sm:$0xf]  ;;  %v1275_v11 = vld [vmem:[#allocation5 + $0x180] sm:$0xf] }
  0x17   :  { %v1316_v8 = vor.u32 %v1398_v6, %v1315_v5  ;;  %v1317_v10 = vld [vmem:[#allocation5 + $0x1e8] sm:$0xf0]  ;;  %v1389_v13 = vld [vmem:[#allocation5 + $0x19c] sm:$0xf0]  ;;  %v1385_v14 = vld [vmem:[#allocation5 + $0x184] sm:$0xf] }
  0x18   :  { %482 = vmatpush.bf16.msra.mxu0 %v1308_v3  ;;  %v1320_v12 = vor.u32 %v1394_v9, %v1317_v10  ;;  %v1277_v15 = vld [vmem:[#allocation5 + $0x1a0] sm:$0xf0]  ;;  %496 = vmatpush.bf16.msra.mxu1 %v1312_v7  ;;  %v1276_v16 = vor.u32 %v1389_v13, %v1275_v11  ;;  %v1283_v18 = vld [vmem:[#allocation5 + $0x188] sm:$0xf]  ;;  %v1386_v20 = vld [vmem:[#allocation5 + $0x18c] sm:$0xf] }
  0x19   :  { %510 = vmatpush.bf16.msra.mxu2 %v1316_v8  ;;  %v1280_v17 = vor.u32 %v1385_v14, %v1277_v15  ;;  %v1390_v19 = vld [vmem:[#allocation5 + $0x1a4] sm:$0xf0]  ;;  %v1285_v22 = vld [vmem:[#allocation5 + $0x1a8] sm:$0xf0]  ;;  %v1243_v23 = vld [vmem:[#allocation5 + $0x140] sm:$0xf] }
  0x1a   :  { %524 = vmatpush.bf16.msra.mxu3 %v1320_v12  ;;  %v1284_v21 = vor.u32 %v1390_v19, %v1283_v18  ;;  %v1381_v24 = vld [vmem:[#allocation5 + $0x15c] sm:$0xf0]  ;;  %v1288_v25 = vor.u32 %v1386_v20, %v1285_v22  ;;  %v1377_v26 = vld [vmem:[#allocation5 + $0x144] sm:$0xf]  ;;  %v1251_v28 = vld [vmem:[#allocation5 + $0x148] sm:$0xf] }
  0x1b   :  { %v1245_v27 = vld [vmem:[#allocation5 + $0x160] sm:$0xf0]  ;;  %v1244_v29 = vor.u32 %v1381_v24, %v1243_v23  ;;  %v1382_v30 = vld [vmem:[#allocation5 + $0x164] sm:$0xf0]  ;;  %v1378_v31 = vld [vmem:[#allocation5 + $0x14c] sm:$0xf] }
  0x1c   :  { %483 = vmatpush.bf16.msra.mxu0 %v1276_v16  ;;  %v1253_v32 = vld [vmem:[#allocation5 + $0x168] sm:$0xf0]  ;;  %497 = vmatpush.bf16.msra.mxu1 %v1280_v17  ;;  %v1248_v33 = vor.u32 %v1377_v26, %v1245_v27  ;;  %v1252_v34 = vor.u32 %v1382_v30, %v1251_v28  ;;  %v1211_v35 = vld [vmem:[#allocation5 + $0x100] sm:$0xf]  ;;  %v1369_v37 = vld [vmem:[#allocation5 + $0x104] sm:$0xf] }
  0x1d   :  { %511 = vmatpush.bf16.msra.mxu2 %v1284_v21  ;;  %v1373_v36 = vld [vmem:[#allocation5 + $0x11c] sm:$0xf0]  ;;  %v1256_v38 = vor.u32 %v1378_v31, %v1253_v32  ;;  %v1213_v39 = vld [vmem:[#allocation5 + $0x120] sm:$0xf0]  ;;  %v1219_v40 = vld [vmem:[#allocation5 + $0x108] sm:$0xf] }
  0x1e   :  { %525 = vmatpush.bf16.msra.mxu3 %v1288_v25  ;;  %v1374_v41 = vld [vmem:[#allocation5 + $0x124] sm:$0xf0]  ;;  %v1370_v42 = vld [vmem:[#allocation5 + $0x10c] sm:$0xf]  ;;  %v1212_v44 = vor.u32 %v1373_v36, %v1211_v35  ;;  %v1216_v45 = vor.u32 %v1369_v37, %v1213_v39  ;;  %v1179_v47 = vld [vmem:[#allocation5 + $0xc0] sm:$0xf] }
  0x1f   :  { %v1221_v43 = vld [vmem:[#allocation5 + $0x128] sm:$0xf0]  ;;  %v1220_v46 = vor.u32 %v1374_v41, %v1219_v40  ;;  %v1365_v48 = vld [vmem:[#allocation5 + $0xdc] sm:$0xf0]  ;;  %v1361_v49 = vld [vmem:[#allocation5 + $0xc4] sm:$0xf] }
  0x20   :  { %484 = vmatpush.bf16.msra.mxu0 %v1244_v29  ;;  %498 = vmatpush.bf16.msra.mxu1 %v1248_v33  ;;  %v1224_v50 = vor.u32 %v1370_v42, %v1221_v43  ;;  %v1181_v51 = vld [vmem:[#allocation5 + $0xe0] sm:$0xf0]  ;;  %v1187_v52 = vld [vmem:[#allocation5 + $0xc8] sm:$0xf]  ;;  %v1362_v54 = vld [vmem:[#allocation5 + $0xcc] sm:$0xf]  ;;  %v1180_v56 = vor.u32 %v1365_v48, %v1179_v47 }
  0x21   :  { %512 = vmatpush.bf16.msra.mxu2 %v1252_v34  ;;  %v1366_v53 = vld [vmem:[#allocation5 + $0xe4] sm:$0xf0]  ;;  %v1189_v55 = vld [vmem:[#allocation5 + $0xe8] sm:$0xf0]  ;;  %v1184_v57 = vor.u32 %v1361_v49, %v1181_v51  ;;  %v1147_v59 = vld [vmem:[#allocation5 + $0x80] sm:$0xf] }
  0x22   :  { %526 = vmatpush.bf16.msra.mxu3 %v1256_v38  ;;  %v1188_v58 = vor.u32 %v1366_v53, %v1187_v52  ;;  %v1357_v60 = vld [vmem:[#allocation5 + $0x9c] sm:$0xf0]  ;;  %v1353_v61 = vld [vmem:[#allocation5 + $0x84] sm:$0xf]  ;;  %v1192_v62 = vor.u32 %v1362_v54, %v1189_v55  ;;  %v1155_v0 = vld [vmem:[#allocation5 + $0x88] sm:$0xf] }
  0x23   :  { %v1149_v63 = vld [vmem:[#allocation5 + $0xa0] sm:$0xf0]  ;;  %v1358_v1 = vld [vmem:[#allocation5 + $0xa4] sm:$0xf0]  ;;  %v1354_v2 = vld [vmem:[#allocation5 + $0x8c] sm:$0xf]  ;;  %v1148_v4 = vor.u32 %v1357_v60, %v1147_v59 }
  0x24   :  { %485 = vmatpush.bf16.msra.mxu0 %v1212_v44  ;;  %499 = vmatpush.bf16.msra.mxu1 %v1216_v45  ;;  %v1157_v3 = vld [vmem:[#allocation5 + $0xa8] sm:$0xf0]  ;;  %v1152_v5 = vor.u32 %v1353_v61, %v1149_v63  ;;  %v1156_v6 = vor.u32 %v1358_v1, %v1155_v0  ;;  %v1115_v7 = vld [vmem:[#allocation5 + $0x40] sm:$0xf]  ;;  %v1345_v9 = vld [vmem:[#allocation5 + $0x44] sm:$0xf] }
  0x25   :  { %513 = vmatpush.bf16.msra.mxu2 %v1220_v46  ;;  %v1349_v8 = vld [vmem:[#allocation5 + $0x5c] sm:$0xf0]  ;;  %v1160_v10 = vor.u32 %v1354_v2, %v1157_v3  ;;  %v1117_v11 = vld [vmem:[#allocation5 + $0x60] sm:$0xf0]  ;;  %v1123_v12 = vld [vmem:[#allocation5 + $0x48] sm:$0xf] }
  0x26   :  { %527 = vmatpush.bf16.msra.mxu3 %v1224_v50  ;;  %v1350_v13 = vld [vmem:[#allocation5 + $0x64] sm:$0xf0]  ;;  %v1346_v14 = vld [vmem:[#allocation5 + $0x4c] sm:$0xf]  ;;  %v1116_v16 = vor.u32 %v1349_v8, %v1115_v7  ;;  %v1083_v17 = vld [vmem:[#allocation5] sm:$0xf]  ;;  %v1120_v20 = vor.u32 %v1345_v9, %v1117_v11 }
  0x27   :  { %v1125_v15 = vld [vmem:[#allocation5 + $0x68] sm:$0xf0]  ;;  %v1341_v18 = vld [vmem:[#allocation5 + $0x1c] sm:$0xf0]  ;;  %v1337_v19 = vld [vmem:[#allocation5 + $0x4] sm:$0xf]  ;;  %v1124_v21 = vor.u32 %v1350_v13, %v1123_v12 }
  0x28   :  { %486 = vmatpush.bf16.msra.mxu0 %v1180_v56  ;;  %500 = vmatpush.bf16.msra.mxu1 %v1184_v57  ;;  %v1085_v22 = vld [vmem:[#allocation5 + $0x20] sm:$0xf0]  ;;  %v1091_v23 = vld [vmem:[#allocation5 + $0x8] sm:$0xf]  ;;  %v1128_v25 = vor.u32 %v1346_v14, %v1125_v15  ;;  %v1338_v26 = vld [vmem:[#allocation5 + $0xc] sm:$0xf]  ;;  %v1084_v32 = vor.u32 %v1341_v18, %v1083_v17 }
  0x29   :  { %514 = vmatpush.bf16.msra.mxu2 %v1188_v58  ;;  %v1342_v24 = vld [vmem:[#allocation5 + $0x24] sm:$0xf0]  ;;  %v1093_v27 = vld [vmem:[#allocation5 + $0x28] sm:$0xf0]  ;;  %v1323_v28 = vld [vmem:[#allocation5 + $0x1d0] sm:$0xf]  ;;  %v1088_v36 = vor.u32 %v1337_v19, %v1085_v22 }
  0x2a   :  { %528 = vmatpush.bf16.msra.mxu3 %v1192_v62  ;;  %v1399_v29 = vld [vmem:[#allocation5 + $0x1ec] sm:$0xf0]  ;;  %v1395_v30 = vld [vmem:[#allocation5 + $0x1d4] sm:$0xf]  ;;  %v1331_v33 = vld [vmem:[#allocation5 + $0x1d8] sm:$0xf]  ;;  %v1092_v37 = vor.u32 %v1342_v24, %v1091_v23  ;;  %v1096_v41 = vor.u32 %v1338_v26, %v1093_v27 }
  0x2b   :  { %v1325_v31 = vld [vmem:[#allocation5 + $0x1f0] sm:$0xf0]  ;;  %v1400_v34 = vld [vmem:[#allocation5 + $0x1f4] sm:$0xf0]  ;;  %v1396_v35 = vld [vmem:[#allocation5 + $0x1dc] sm:$0xf]  ;;  %v1324_v42 = vor.u32 %v1399_v29, %v1323_v28 }
  0x2c   :  { %487 = vmatpush.bf16.msra.mxu0 %v1148_v4  ;;  %501 = vmatpush.bf16.msra.mxu1 %v1152_v5  ;;  %v1333_v38 = vld [vmem:[#allocation5 + $0x1f8] sm:$0xf0]  ;;  %v77_v39 = vld [vmem:[#allocation2] sm:$0xff]  ;;  %v78_v40 = vld [vmem:[#allocation2 + $0x8] sm:$0x3]  ;;  %v1328_v43 = vor.u32 %v1395_v30, %v1325_v31  ;;  %v1332_v44 = vor.u32 %v1400_v34, %v1331_v33  ;;  %vm672_vm0 = vcmask 1041408  }
  0x2d   :  { %515 = vmatpush.bf16.msra.mxu2 %v1156_v6  ;;  %v1291_v45 = vld [vmem:[#allocation5 + $0x190] sm:$0xf]  ;;  %v1387_v47 = vld [vmem:[#allocation5 + $0x194] sm:$0xf]  ;;  %v1336_v48 = vor.u32 %v1396_v35, %v1333_v38  ;;  %v1606_v49 = vpack.c.bf16 %v78_v40, %v77_v39  ;;  %v1299_v51 = vld [vmem:[#allocation5 + $0x198] sm:$0xf] }
  0x2e   :  { %529 = vmatpush.bf16.msra.mxu3 %v1160_v10  ;;  %v1391_v46 = vld [vmem:[#allocation5 + $0x1ac] sm:$0xf0]  ;;  %v1293_v50 = vld [vmem:[#allocation5 + $0x1b0] sm:$0xf0]  ;;  %v1392_v52 = vld [vmem:[#allocation5 + $0x1b4] sm:$0xf0] }
  0x2f   :  { %v1388_v53 = vld [vmem:[#allocation5 + $0x19c] sm:$0xf]  ;;  %v1292_v55 = vor.u32 %v1391_v46, %v1291_v45  ;;  %v1296_v56 = vor.u32 %v1387_v47, %v1293_v50  ;;  %v1300_v57 = vor.u32 %v1392_v52, %v1299_v51  ;;  %v1259_v58 = vld [vmem:[#allocation5 + $0x150] sm:$0xf]  ;;  %v1379_v60 = vld [vmem:[#allocation5 + $0x154] sm:$0xf] }
  0x30   :  { %488 = vmatpush.bf16.msra.mxu0 %v1116_v16  ;;  %502 = vmatpush.bf16.msra.mxu1 %v1120_v20  ;;  %v1301_v54 = vld [vmem:[#allocation5 + $0x1b8] sm:$0xf0]  ;;  %v1383_v59 = vld [vmem:[#allocation5 + $0x16c] sm:$0xf0]  ;;  %v1261_v62 = vld [vmem:[#allocation5 + $0x170] sm:$0xf0] }
  0x31   :  { %516 = vmatpush.bf16.msra.mxu2 %v1124_v21  ;;  %v1304_v61 = vor.u32 %v1388_v53, %v1301_v54  ;;  %v1267_v63 = vld [vmem:[#allocation5 + $0x158] sm:$0xf]  ;;  %v1380_v1 = vld [vmem:[#allocation5 + $0x15c] sm:$0xf]  ;;  %v1260_v3 = vor.u32 %v1383_v59, %v1259_v58  ;;  %v1264_v4 = vor.u32 %v1379_v60, %v1261_v62  ;;  %v1227_v6 = vld [vmem:[#allocation5 + $0x110] sm:$0xf] }
  0x32   :  { %530 = vmatpush.bf16.msra.mxu3 %v1128_v25  ;;  %v1384_v0 = vld [vmem:[#allocation5 + $0x174] sm:$0xf0]  ;;  %v1269_v2 = vld [vmem:[#allocation5 + $0x178] sm:$0xf0]  ;;  %v1375_v7 = vld [vmem:[#allocation5 + $0x12c] sm:$0xf0] }
  0x33   :  { %v1268_v5 = vor.u32 %v1384_v0, %v1267_v63  ;;  %v1371_v8 = vld [vmem:[#allocation5 + $0x114] sm:$0xf]  ;;  %v1272_v9 = vor.u32 %v1380_v1, %v1269_v2  ;;  %v1235_v11 = vld [vmem:[#allocation5 + $0x118] sm:$0xf]  ;;  %v1372_v13 = vld [vmem:[#allocation5 + $0x11c] sm:$0xf]  ;;  %v1228_v15 = vor.u32 %v1375_v7, %v1227_v6 }
  0x34   :  { %489 = vmatpush.bf16.msra.mxu0 %v1084_v32  ;;  %503 = vmatpush.bf16.msra.mxu1 %v1088_v36  ;;  %v1229_v10 = vld [vmem:[#allocation5 + $0x130] sm:$0xf0]  ;;  %v1376_v12 = vld [vmem:[#allocation5 + $0x134] sm:$0xf0]  ;;  %v1237_v14 = vld [vmem:[#allocation5 + $0x138] sm:$0xf0] }
  0x35   :  { %517 = vmatpush.bf16.msra.mxu2 %v1092_v37  ;;  %v1232_v16 = vor.u32 %v1371_v8, %v1229_v10  ;;  %v1236_v17 = vor.u32 %v1376_v12, %v1235_v11  ;;  %v1195_v18 = vld [vmem:[#allocation5 + $0xd0] sm:$0xf]  ;;  %v1363_v20 = vld [vmem:[#allocation5 + $0xd4] sm:$0xf]  ;;  %v1240_v21 = vor.u32 %v1372_v13, %v1237_v14  ;;  %v1203_v23 = vld [vmem:[#allocation5 + $0xd8] sm:$0xf] }
  0x36   :  { %531 = vmatpush.bf16.msra.mxu3 %v1096_v41  ;;  %v1367_v19 = vld [vmem:[#allocation5 + $0xec] sm:$0xf0]  ;;  %v1197_v22 = vld [vmem:[#allocation5 + $0xf0] sm:$0xf0]  ;;  %v1368_v24 = vld [vmem:[#allocation5 + $0xf4] sm:$0xf0] }
  0x37   :  { %490 = vmatmul.bf16.vlgmr.msra.gmra.mxu0 %v1606_v49  ;;  %504 = vmatmul.bf16.vlgmr.msra.gmra.mxu1 %v1606_v49  ;;  %v1364_v25 = vld [vmem:[#allocation5 + $0xdc] sm:$0xf]  ;;  %v1196_v27 = vor.u32 %v1367_v19, %v1195_v18  ;;  %v1200_v28 = vor.u32 %v1363_v20, %v1197_v22  ;;  %v1204_v29 = vor.u32 %v1368_v24, %v1203_v23  ;;  %v1163_v30 = vld [vmem:[#allocation5 + $0x90] sm:$0xf]  ;;  %v1355_v32 = vld [vmem:[#allocation5 + $0x94] sm:$0xf] }
  0x38   :  { %538 = vmatpush.bf16.msrb.mxu0 %v1324_v42  ;;  %552 = vmatpush.bf16.msrb.mxu1 %v1328_v43  ;;  %v1205_v26 = vld [vmem:[#allocation5 + $0xf8] sm:$0xf0]  ;;  %v1359_v31 = vld [vmem:[#allocation5 + $0xac] sm:$0xf0]  ;;  %v1165_v34 = vld [vmem:[#allocation5 + $0xb0] sm:$0xf0] }
  0x39   :  { %566 = vmatpush.bf16.msrb.mxu2 %v1332_v44  ;;  %532 = vmatmul.bf16.vlgmr.msra.gmra.mxu3 %v1606_v49  ;;  %v1208_v33 = vor.u32 %v1364_v25, %v1205_v26  ;;  %v1171_v35 = vld [vmem:[#allocation5 + $0x98] sm:$0xf]  ;;  %v1356_v37 = vld [vmem:[#allocation5 + $0x9c] sm:$0xf]  ;;  %v1164_v39 = vor.u32 %v1359_v31, %v1163_v30  ;;  %v1168_v40 = vor.u32 %v1355_v32, %v1165_v34  ;;  %v1131_v42 = vld [vmem:[#allocation5 + $0x50] sm:$0xf] }
  0x3a   :  { %580 = vmatpush.bf16.msrb.mxu3 %v1336_v48  ;;  %518 = vmatmul.bf16.vlgmr.msra.gmra.mxu2 %v1606_v49  ;;  %v1360_v36 = vld [vmem:[#allocation5 + $0xb4] sm:$0xf0]  ;;  %v1173_v38 = vld [vmem:[#allocation5 + $0xb8] sm:$0xf0]  ;;  %v1351_v43 = vld [vmem:[#allocation5 + $0x6c] sm:$0xf0] }
  0x3b   :  { %v1172_v41 = vor.u32 %v1360_v36, %v1171_v35  ;;  %v1347_v44 = vld [vmem:[#allocation5 + $0x54] sm:$0xf]  ;;  %v1176_v45 = vor.u32 %v1356_v37, %v1173_v38  ;;  %v1139_v47 = vld [vmem:[#allocation5 + $0x58] sm:$0xf]  ;;  %v1348_v50 = vld [vmem:[#allocation5 + $0x5c] sm:$0xf]  ;;  %v1132_v52 = vor.u32 %v1351_v43, %v1131_v42 }
  0x3c   :  { %539 = vmatpush.bf16.msrb.mxu0 %v1292_v55  ;;  %553 = vmatpush.bf16.msrb.mxu1 %v1296_v56  ;;  %v1133_v46 = vld [vmem:[#allocation5 + $0x70] sm:$0xf0]  ;;  %v1352_v48 = vld [vmem:[#allocation5 + $0x74] sm:$0xf0]  ;;  %v1141_v51 = vld [vmem:[#allocation5 + $0x78] sm:$0xf0] }
  0x3d   :  { %567 = vmatpush.bf16.msrb.mxu2 %v1300_v57  ;;  %v1136_v53 = vor.u32 %v1347_v44, %v1133_v46  ;;  %v1140_v54 = vor.u32 %v1352_v48, %v1139_v47  ;;  %v1099_v55 = vld [vmem:[#allocation5 + $0x10] sm:$0xf]  ;;  %v1339_v57 = vld [vmem:[#allocation5 + $0x14] sm:$0xf]  ;;  %v1144_v58 = vor.u32 %v1348_v50, %v1141_v51  ;;  %v1107_v60 = vld [vmem:[#allocation5 + $0x18] sm:$0xf] }
  0x3e   :  { %581 = vmatpush.bf16.msrb.mxu3 %v1304_v61  ;;  %v1343_v56 = vld [vmem:[#allocation5 + $0x2c] sm:$0xf0]  ;;  %v1101_v59 = vld [vmem:[#allocation5 + $0x30] sm:$0xf0]  ;;  %v1344_v61 = vld [vmem:[#allocation5 + $0x34] sm:$0xf0] }
  0x3f   :  { %v1340_v62 = vld [vmem:[#allocation5 + $0x1c] sm:$0xf]  ;;  %v1100_v0 = vor.u32 %v1343_v56, %v1099_v55  ;;  %v1104_v1 = vor.u32 %v1339_v57, %v1101_v59  ;;  %v1108_v2 = vor.u32 %v1344_v61, %v1107_v60  ;;  %s1566_s2 = smov [#allocation10]   ;;  %s1066_s13 = sshll.u32 %s2000_s4, 4  ;;  %s1067_s13 = int_to_ptr.hbm [resolvable:$true] %s1066_s13 }
  0x40   :  { %540 = vmatpush.bf16.msrb.mxu0 %v1260_v3  ;;  %554 = vmatpush.bf16.msrb.mxu1 %v1264_v4  ;;  %v1109_v63 = vld [vmem:[#allocation5 + $0x38] sm:$0xf0]  ;;  %s1064_s3 = sshll.u32 %s1566_s2, 4  ;;  %s1567_s4 = smov 1024   ;;  %s1065_s3 = int_to_ptr.vmem [resolvable:$true] %s1064_s3 }
  0x41   :  { %568 = vmatpush.bf16.msrb.mxu2 %v1268_v5  ;;  %v1112_v3 = vor.u32 %v1340_v62, %v1109_v63  ;;  %v1616_v4 = vld [vmem:[#allocation7] ss:$4 sm:$0xff]  ;;  %s1568_s14 = smov 64  }
  0x42   :  { %582 = vmatpush.bf16.msrb.mxu3 %v1272_v9  ;;  %v146_v5 = vperm.slane %v1616_v4, 0  ;;  %v147_v6 = vperm.slane %v1616_v4, 1  ;;  %v149_v14 = vperm.slane %v1616_v4, 3  ;;  %v150_v43 = vperm.slane %v1616_v4, 4 }
  0x43   :  { %v151_v44 = vperm.slane %v1616_v4, 5  ;;  %v152_v55 = vperm.slane %v1616_v4, 6  ;;  %v153_v56 = vperm.slane %v1616_v4, 7 }
  0x44   :  { %541 = vmatpush.bf16.msrb.mxu0 %v1228_v15  ;;  %555 = vmatpush.bf16.msrb.mxu1 %v1232_v16 }
  0x45   :  { %569 = vmatpush.bf16.msrb.mxu2 %v1236_v17 }
  0x46   :  { %583 = vmatpush.bf16.msrb.mxu3 %v1240_v21 }
  0x48   :  { %542 = vmatpush.bf16.msrb.mxu0 %v1196_v27  ;;  %556 = vmatpush.bf16.msrb.mxu1 %v1200_v28 }
  0x49   :  { %570 = vmatpush.bf16.msrb.mxu2 %v1204_v29 }
  0x4a   :  { %584 = vmatpush.bf16.msrb.mxu3 %v1208_v33 }
  0x4c   :  { %543 = vmatpush.bf16.msrb.mxu0 %v1164_v39  ;;  %557 = vmatpush.bf16.msrb.mxu1 %v1168_v40 }
  0x4d   :  { %571 = vmatpush.bf16.msrb.mxu2 %v1172_v41 }
  0x4e   :  { %585 = vmatpush.bf16.msrb.mxu3 %v1176_v45 }
  0x50   :  { %544 = vmatpush.bf16.msrb.mxu0 %v1132_v52  ;;  %558 = vmatpush.bf16.msrb.mxu1 %v1136_v53 }
  0x51   :  { %572 = vmatpush.bf16.msrb.mxu2 %v1140_v54 }
  0x52   :  { %586 = vmatpush.bf16.msrb.mxu3 %v1144_v58 }
  0x54   :  { %545 = vmatpush.bf16.msrb.mxu0 %v1100_v0  ;;  %559 = vmatpush.bf16.msrb.mxu1 %v1104_v1 }
  0x55   :  { %573 = vmatpush.bf16.msrb.mxu2 %v1108_v2 }
  0x56   :  { %587 = vmatpush.bf16.msrb.mxu3 %v1112_v3 }
  0x57   :  { %546 = vmatmul.bf16.vlgmr.msrb.gmra.mxu0 %v1606_v49  ;;  %560 = vmatmul.bf16.vlgmr.msrb.gmra.mxu1 %v1606_v49 }
  0x58   :  { %574 = vmatmul.bf16.vlgmr.msrb.gmra.mxu2 %v1606_v49 }
  0x59   :  { %588 = vmatmul.bf16.vlgmr.msrb.gmra.mxu3 %v1606_v49  ;;  %v148_v49 = vperm.slane %v1616_v4, 2 }
  0xb4   :  { %v491_v7 = vpop.f32.mrf.mxu0  ;;  %v505_v9 = vpop.f32.mrf.mxu1 }
  0xb5   :  { %v1620_v8 = vadd.f32 %v491_v7, %v146_v5  ;;  %v1622_v10 = vadd.f32 %v505_v9, %v147_v6 }
  0xb7   :  { %v680_v11 = vmul.f32 %v1620_v8, %v1620_v8  ;;  %v669_v12 = vadd.f32 %v1622_v10, %v1620_v8  ;;  %v681_v13 = vmul.f32 %v1622_v10, %v1622_v10 }
  0xb9   :  { %670 = vadd.xlane.f32.xlu0 %v669_v12  ;;  %v684_v15 = vadd.f32 %v681_v13, %v680_v11 }
  0xbb   :  { %685 = vadd.xlane.f32.xlu2 %v684_v15 }
  0xbc   :  { %v533_v18 = vpop.f32.mrf.mxu3  ;;  %v493_v19 = vpop.f32.mrf.mxu0 }
  0xbd   :  { %v519_v16 = vpop.f32.mrf.mxu2  ;;  %v1634_v20 = vadd.f32 %v533_v18, %v149_v14  ;;  %v1636_v21 = vadd.f32 %v493_v19, %v146_v5  ;;  %v507_v22 = vpop.f32.mrf.mxu1 }
  0xbe   :  { %v1632_v17 = vadd.f32 %v519_v16, %v148_v49  ;;  %v1638_v23 = vadd.f32 %v507_v22, %v147_v6 }
  0xbf   :  { %v673_v25 = vsel %vm672_vm0, %v1636_v21, 0.0  ;;  %v783_v29 = vmul.f32 %v1634_v20, %v1634_v20  ;;  %v682_v30 = vmul.f32 %v1636_v21, %v1636_v21 }
  0xc0   :  { %v772_v24 = vadd.f32 %v1634_v20, %v1632_v17  ;;  %v674_v26 = vsel %vm672_vm0, %v1638_v23, 0.0  ;;  %v782_v28 = vmul.f32 %v1632_v17, %v1632_v17  ;;  %v683_v31 = vmul.f32 %v1638_v23, %v1638_v23 }
  0xc1   :  { %v675_v27 = vadd.f32 %v674_v26, %v673_v25  ;;  %v687_v37 = vsel %vm672_vm0, %v682_v30, 0.0 }
  0xc2   :  { %773 = vadd.xlane.f32.xlu1 %v772_v24  ;;  %v786_v34 = vadd.f32 %v783_v29, %v782_v28  ;;  %v688_v38 = vsel %vm672_vm0, %v683_v31, 0.0 }
  0xc3   :  { %676 = vadd.xlane.f32.xlu0 %v675_v27  ;;  %v689_v39 = vadd.f32 %v688_v38, %v687_v37 }
  0xc4   :  { %v535_v33 = vpop.f32.mrf.mxu3 }
  0xc5   :  { %v521_v32 = vpop.f32.mrf.mxu2  ;;  %v1656_v36 = vadd.f32 %v535_v33, %v149_v14 }
  0xc6   :  { %v1654_v35 = vadd.f32 %v521_v32, %v148_v49 }
  0xc7   :  { %v776_v41 = vsel %vm672_vm0, %v1656_v36, 0.0  ;;  %v785_v54 = vmul.f32 %v1656_v36, %v1656_v36 }
  0xc8   :  { %v775_v40 = vsel %vm672_vm0, %v1654_v35, 0.0  ;;  %v784_v53 = vmul.f32 %v1654_v35, %v1654_v35 }
  0xc9   :  { %v777_v42 = vadd.f32 %v776_v41, %v775_v40  ;;  %v790_v61 = vsel %vm672_vm0, %v785_v54, 0.0 }
  0xca   :  { %787 = vadd.xlane.f32.xlu1 %v786_v34  ;;  %v789_v60 = vsel %vm672_vm0, %v784_v53, 0.0  ;;  %v595_v34 = vlaneseq }
  0xcb   :  { %690 = vadd.xlane.f32.xlu0 %v689_v39  ;;  %v791_v2 = vadd.f32 %v790_v61, %v789_v60 }
  0xcc   :  { %v596_v37 = vshrl.u32 %v595_v34, 7 }
  0xce   :  { %v604_v38 = vand.u32 65535, %v596_v37  ;;  %v605_v39 = vshrl.u32 %v596_v37, 16 }
  0xd0   :  { %v608_v40 = vmul.u32 52428, %v604_v38  ;;  %v607_v41 = vmul.u32 52429, %v604_v38 }
  0xd2   :  { %778 = vadd.xlane.f32.xlu1 %v777_v42  ;;  %v609_v42 = vmul.u32 52429, %v605_v39 }
  0xd4   :  { %v547_v45 = vpop.f32.mrf.mxu0  ;;  %v561_v47 = vpop.f32.mrf.mxu1 }
  0xd5   :  { %v1666_v46 = vadd.f32 %v547_v45, %v150_v43  ;;  %v1668_v48 = vadd.f32 %v561_v47, %v151_v44  ;;  %v610_v47 = vmul.u32 52428, %v605_v39 }
  0xd7   :  { %v878_v50 = vmul.f32 %v1666_v46, %v1666_v46  ;;  %v868_v51 = vadd.f32 %v1668_v48, %v1666_v46  ;;  %v879_v52 = vmul.f32 %v1668_v48, %v1668_v48 }
  0xd9   :  { %869 = vadd.xlane.f32.xlu2 %v868_v51  ;;  %v882_v57 = vadd.f32 %v879_v52, %v878_v50  ;;  %v1565_v50 = vmov 0   ;;  %v1722_v52 = vadd.s32 8, %v596_v37 }
  0xdb   :  { %v575_v58 = vpop.f32.mrf.mxu2  ;;  %883 = vadd.xlane.f32.xlu0 %v882_v57  ;;  %v633_v53 = vand.u32 65535, %v1722_v52 }
  0xdc   :  { %v589_v59 = vpop.f32.mrf.mxu3  ;;  %v1684_v62 = vadd.f32 %v575_v58, %v152_v55  ;;  %v549_v0 = vpop.f32.mrf.mxu0  ;;  %v612_v58 = vshrl.u32 %v608_v40, 16 }
  0xdd   :  { %v1686_v63 = vadd.f32 %v589_v59, %v153_v56  ;;  %v563_v1 = vpop.f32.mrf.mxu1  ;;  %v1688_v3 = vadd.f32 %v549_v0, %v150_v43  ;;  %v611_v43 = vshll.u32 %v608_v40, 16  ;;  %v637_v57 = vmul.u32 52428, %v633_v53 }
  0xde   :  { %v1690_v5 = vadd.f32 %v563_v1, %v151_v44  ;;  %v974_v28 = vmul.f32 %v1684_v62, %v1684_v62  ;;  %v613_v44 = vshll.u32 %v609_v42, 16  ;;  %v636_v0 = vmul.u32 52429, %v633_v53 }
  0xdf   :  { %v964_v4 = vadd.f32 %v1686_v63, %v1684_v62  ;;  %v871_v12 = vsel %vm672_vm0, %v1688_v3, 0.0  ;;  %v880_v25 = vmul.f32 %v1688_v3, %v1688_v3  ;;  %v975_v29 = vmul.f32 %v1686_v63, %v1686_v63 }
  0xe0   :  { %v872_v49 = vsel %vm672_vm0, %v1690_v5, 0.0  ;;  %v881_v26 = vmul.f32 %v1690_v5, %v1690_v5  ;;  %vm615_vm1 = vc.u32 %v607_v41, %v611_v43  ;;  %v617_v45 = vadd.s32 %v611_v43, %v607_v41 }
  0xe1   :  { %792 = vadd.xlane.f32.xlu2 %v791_v2  ;;  %v873_v19 = vadd.f32 %v872_v49, %v871_v12  ;;  %v885_v30 = vsel %vm672_vm0, %v880_v25, 0.0  ;;  %v978_v33 = vadd.f32 %v975_v29, %v974_v28  ;;  %v616_v51 = vsel %vm615_vm1, 1, %v1565_v50 }
  0xe2   :  { %v886_v31 = vsel %vm672_vm0, %v881_v26, 0.0  ;;  %vm619_vm2 = vc.u32 %v617_v45, %v613_v44  ;;  %v618_v54 = vadd.s32 %v616_v51, %v610_v47  ;;  %v640_v2 = vshll.u32 %v637_v57, 16 }
  0xe3   :  { %v577_v6 = vpop.f32.mrf.mxu2  ;;  %965 = vadd.xlane.f32.xlu0 %v964_v4  ;;  %v887_v32 = vadd.f32 %v886_v31, %v885_v30  ;;  %v641_v34 = vshrl.u32 %v637_v57, 16 }
  0xe4   :  { %v1694_v7 = vadd.f32 %v577_v6, %v152_v55  ;;  %v591_v9 = vpop.f32.mrf.mxu3  ;;  %v620_v55 = vsel %vm619_vm2, 1, %v1565_v50  ;;  %v614_v6 = vshrl.u32 %v609_v42, 16  ;;  %vm644_vm3 = vc.u32 %v636_v0, %v640_v2 }
  0xe5   :  { %v1696_v11 = vadd.f32 %v591_v9, %v153_v56  ;;  %v634_v56 = vshrl.u32 %v1722_v52, 16  ;;  %v622_v59 = vadd.s32 %v620_v55, %v618_v54 }
  0xe6   :  { %v967_v13 = vsel %vm672_vm0, %v1694_v7, 0.0  ;;  %v976_v14 = vmul.f32 %v1694_v7, %v1694_v7 }
  0xe7   :  { %v968_v15 = vsel %vm672_vm0, %v1696_v11, 0.0  ;;  %v977_v16 = vmul.f32 %v1696_v11, %v1696_v11  ;;  %v638_v1 = vmul.u32 52429, %v634_v56  ;;  %v623_v9 = vadd.s32 %v622_v59, %v612_v58 }
  0xe8   :  { %v969_v18 = vadd.f32 %v968_v15, %v967_v13  ;;  %v981_v22 = vsel %vm672_vm0, %v976_v14, 0.0  ;;  %v646_v15 = vadd.s32 %v640_v2, %v636_v0 }
  0xe9   :  { %v982_v24 = vsel %vm672_vm0, %v977_v16, 0.0  ;;  %874 = vadd.xlane.f32.xlu2 %v873_v19  ;;  %v642_v14 = vshll.u32 %v638_v1, 16  ;;  %v624_v16 = vadd.s32 %v623_v9, %v614_v6 }
  0xea   :  { %970 = vadd.xlane.f32.xlu1 %v969_v18  ;;  %v983_v27 = vadd.f32 %v982_v24, %v981_v22  ;;  %v639_v22 = vmul.u32 52428, %v634_v56  ;;  %v645_v24 = vsel %vm644_vm3, 1, %v1565_v50 }
  0xeb   :  { %vm648_vm4 = vc.u32 %v646_v15, %v642_v14  ;;  %v1757_v15 = vld [vmem:[#allocation8] sm:$0x3] }
  0xec   :  { %984 = vadd.xlane.f32.xlu0 %v983_v27  ;;  %v625_v27 = vshrl.u32 %v624_v16, 2  ;;  %v647_v28 = vadd.s32 %v645_v24, %v639_v22  ;;  %v649_v30 = vsel %vm648_vm4, 1, %v1565_v50  ;;  %v643_v50 = vshrl.u32 %v638_v1, 16  ;;  %v1743_v1 = vld [vmem:[#allocation7 + $0x2] ss:$4 sm:$0x3] }
  0xed   :  { %v745_v24 = vperm.slane %v1743_v1, 1 }
  0xee   :  { %v651_v38 = vadd.s32 %v649_v30, %v647_v28 }
  0xf0   :  { %v652_v53 = vadd.s32 %v651_v38, %v641_v34 }
  0xf1   :  { %979 = vadd.xlane.f32.xlu2 %v978_v33 }
  0xf2   :  { %888 = vadd.xlane.f32.xlu1 %v887_v32  ;;  %v626_v32 = vmul.u32 5, %v625_v27  ;;  %v653_v0 = vadd.s32 %v652_v53, %v643_v50 }
  0xf4   :  { %v627_v51 = vsub.s32 %v596_v37, %v626_v32  ;;  %v654_v16 = vshrl.u32 %v653_v0, 2  ;;  %v1772_v32 = vld [vmem:[#allocation7 + $0x9] ss:$4 sm:$0x3] }
  0xf5   :  { %v835_v53 = vperm.slane %v1772_v32, 0 }
  0xf6   :  { %vm659_vm5 = vcmp.ne.s32.totalorder %v627_v51, 0  ;;  %vm661_vm6 = vcmp.lt.s32.totalorder %v627_v51, 0  ;;  %v665_v37 = vadd.s32 5, %v627_v51  ;;  %v655_v34 = vmul.u32 5, %v654_v16 }
  0xf7   :  { %vm1747_vm9 = vmand %vm661_vm6, %vm659_vm5 }
  0xf8   :  { %v667_v22 = vsel %vm1747_vm9, %v665_v37, %v627_v51  ;;  %v1785_v51 = vld [vmem:[#allocation7 + $0xa] ss:$4 sm:$0x3]  ;;  %v836_v37 = vperm.slane %v1772_v32, 1 }
  0xf9   :  { %vm1775_vm11 = vcmp.eq.s32.totalorder %v667_v22, 0  ;;  %v846_v6 = vperm.slane %v1785_v51, 0 }
 0x12c   :  { %v671_v60 = vpop.xlane.xlu0 %670 }
 0x12d   :  { %v1726_v61 = vmul.f32 0.00390625, %v671_v60  ;;  %v1740_v60 = vld [vmem:[#allocation7 + $0x1] ss:$4 sm:$0x3] }
 0x12e   :  { %v686_v4 = vpop.xlane.xlu2 %685  ;;  %v733_v9 = vperm.slane %v1740_v60, 0 }
 0x12f   :  { %v692_v12 = vmul.f32 0.00390625, %v686_v4  ;;  %v694_v49 = vmul.f32 %v1726_v61, %v1726_v61  ;;  %v723_v14 = vsub.f32 %v1622_v10, %v1726_v61  ;;  %v760_v10 = vperm.slane %v1757_v15, 0 }
 0x131   :  { %v696_v13 = vsub.f32 %v692_v12, %v694_v49  ;;  %v734_v12 = vperm.slane %v1740_v60, 1 }
 0x133   :  { %v698_v18 = vmax.f32 %v696_v13, 0.0  ;;  %v722_v13 = vsub.f32 %v1620_v8, %v1726_v61  ;;  %v761_v61 = vperm.slane %v1757_v15, 1 }
 0x135   :  { %v774_v19 = vpop.xlane.xlu1 %773  ;;  %v700_v25 = vadd.f32 1e-05, %v698_v18  ;;  %v744_v18 = vperm.slane %v1743_v1, 0 }
 0x136   :  { %v677_v26 = vpop.xlane.xlu0 %676  ;;  %v1730_v29 = vmul.f32 0.00390625, %v774_v19 }
 0x137   :  { %1413 = vrsqrt.f32 %v700_v25  ;;  %v1734_v39 = vmul.f32 0.00390625, %v677_v26  ;;  %vm708_vm7 = vweird.f32 %v700_v25 }
 0x138   :  { %v796_v31 = vmul.f32 %v1730_v29, %v1730_v29 }
 0x139   :  { %v695_v45 = vmul.f32 %v1734_v39, %v1734_v39 }
 0x13d   :  { %v788_v33 = vpop.xlane.xlu1 %787  ;;  %v1414_v41 = vpop.eup %1413 }
 0x13e   :  { %v794_v40 = vmul.f32 0.00390625, %v788_v33  ;;  %v691_v42 = vpop.xlane.xlu0 %690  ;;  %v703_v43 = vmul.f32 %v1414_v41, %v700_v25  ;;  %vm709_vm8 = vweird.f32 %v1414_v41 }
 0x13f   :  { %v693_v47 = vmul.f32 0.00390625, %v691_v42  ;;  %vm710_vm10 = vmor %vm708_vm7, %vm709_vm8 }
 0x140   :  { %v798_v44 = vsub.f32 %v794_v40, %v796_v31  ;;  %v704_v54 = vmul.f32 %v1414_v41, %v703_v43 }
 0x141   :  { %v697_v56 = vsub.f32 %v693_v47, %v695_v45 }
 0x142   :  { %v800_v55 = vmax.f32 %v798_v44, 0.0  ;;  %v705_v58 = vmul.f32 0.5, %v704_v54 }
 0x143   :  { %v699_v59 = vmax.f32 %v697_v56, 0.0 }
 0x144   :  { %v1738_v57 = vadd.f32 1e-05, %v800_v55  ;;  %v706_v2 = vsub.f32 1.5, %v705_v58 }
 0x145   :  { %v1745_v4 = vadd.f32 1e-05, %v699_v59  ;;  %v779_v38 = vpop.xlane.xlu1 %778 }
 0x146   :  { %1415 = vrsqrt.f32 %v1738_v57  ;;  %v707_v49 = vmul.f32 %v1414_v41, %v706_v2  ;;  %v1789_v55 = vmul.f32 0.00390625, %v779_v38  ;;  %v656_v2 = vsub.s32 %v1722_v52, %v655_v34 }
 0x147   :  { %1417 = vrsqrt.f32 %v1745_v4  ;;  %vm810_vm12 = vweird.f32 %v1738_v57  ;;  %v847_v34 = vperm.slane %v1785_v51, 1  ;;  %vm718_vm2 = vweird.f32 %v1745_v4 }
 0x148   :  { %v711_v19 = vsel %vm710_vm10, %v1414_v41, %v707_v49  ;;  %v797_v52 = vmul.f32 %v1789_v55, %v1789_v55  ;;  %vm660_vm14 = vcmp.ne.s32.totalorder %v656_v2, 0  ;;  %vm662_vm15 = vcmp.lt.s32.totalorder %v656_v2, 0 }
 0x149   :  { %v726_v25 = vmul.f32 %v722_v13, %v711_v19  ;;  %v727_v26 = vmul.f32 %v723_v14, %v711_v19  ;;  %v824_v14 = vsub.f32 %v1632_v17, %v1730_v29  ;;  %v1811_v17 = vld [vmem:[#allocation8 + $0x2] sm:$0x3]  ;;  %vm1817_vm3 = vmand %vm662_vm15, %vm660_vm14 }
 0x14b   :  { %v737_v30 = vmul.f32 %v733_v9, %v726_v25  ;;  %v738_v31 = vmul.f32 %v734_v12, %v727_v26 }
 0x14c   :  { %v870_v8 = vpop.xlane.xlu2 %869  ;;  %v1416_v27 = vpop.eup %1415 }
 0x14d   :  { %v1766_v28 = vmul.f32 0.00390625, %v870_v8  ;;  %v805_v33 = vmul.f32 %v1416_v27, %v1738_v57  ;;  %v1418_v44 = vpop.eup %1417  ;;  %v748_v45 = vadd.f32 %v744_v18, %v737_v30  ;;  %v749_v47 = vadd.f32 %v745_v24, %v738_v31 }
 0x14e   :  { %v884_v40 = vpop.xlane.xlu0 %883  ;;  %v713_v54 = vmul.f32 %v1418_v44, %v1745_v4  ;;  %vm811_vm13 = vweird.f32 %v1416_v27  ;;  %v825_v8 = vsub.f32 %v1634_v20, %v1730_v29  ;;  %vm719_vm1 = vweird.f32 %v1418_v44 }
 0x14f   :  { %v892_v42 = vmul.f32 %v1766_v28, %v1766_v28  ;;  %v890_v43 = vmul.f32 0.00390625, %v884_v40  ;;  %v806_v50 = vmul.f32 %v1416_v27, %v805_v33  ;;  %v764_v58 = vsel %vm1775_vm11, %v760_v10, %v748_v45  ;;  %vm812_vm0 = vmor %vm810_vm12, %vm811_vm13 }
 0x150   :  { %v765_v59 = vsel %vm1775_vm11, %v761_v61, %v749_v47  ;;  %768 = vst [vmem:[#allocation10] sm:$0xff] %v764_v58  ;;  %v714_v49 = vmul.f32 %v1418_v44, %v713_v54  ;;  %v666_v40 = vadd.s32 5, %v656_v2  ;;  %v724_v47 = vsub.f32 %v1636_v21, %v1734_v39  ;;  %vm720_vm4 = vmor %vm718_vm2, %vm719_vm1 }
 0x151   :  { %v894_v56 = vsub.f32 %v890_v43, %v892_v42  ;;  %v807_v0 = vmul.f32 0.5, %v806_v50  ;;  %769 = vst [vmem:[#allocation10 + $0x8] sm:$0xff] %v765_v59  ;;  %v725_v50 = vsub.f32 %v1638_v23, %v1734_v39  ;;  %v857_v54 = vperm.slane %v1811_v17, 1 }
 0x152   :  { %v715_v22 = vmul.f32 0.5, %v714_v49  ;;  %v668_v21 = vsel %vm1817_vm3, %v666_v40, %v656_v2 }
 0x153   :  { %v896_v13 = vmax.f32 %v894_v56, 0.0  ;;  %v808_v16 = vsub.f32 1.5, %v807_v0  ;;  %vm1854_vm5 = vcmp.eq.s32.totalorder %v668_v21, 0 }
 0x154   :  { %v793_v19 = vpop.xlane.xlu2 %792  ;;  %v716_v57 = vsub.f32 1.5, %v715_v22 }
 0x155   :  { %v1805_v25 = vadd.f32 1e-05, %v896_v13  ;;  %v795_v26 = vmul.f32 0.00390625, %v793_v19  ;;  %v809_v30 = vmul.f32 %v1416_v27, %v808_v16 }
 0x156   :  { %v966_v31 = vpop.xlane.xlu0 %965  ;;  %v717_v43 = vmul.f32 %v1418_v44, %v716_v57  ;;  %v1866_v57 = vld [vmem:[#allocation7 + $0x12] ss:$4 sm:$0x3] }
 0x157   :  { %1419 = vrsqrt.f32 %v1805_v25  ;;  %v799_v33 = vsub.f32 %v795_v26, %v797_v52  ;;  %v813_v38 = vsel %vm812_vm0, %v1416_v27, %v809_v30  ;;  %v856_v27 = vperm.slane %v1811_v17, 0 }
 0x158   :  { %v828_v42 = vmul.f32 %v824_v14, %v813_v38  ;;  %v829_v20 = vmul.f32 %v825_v8, %v813_v38  ;;  %v721_v58 = vsel %vm720_vm4, %v1418_v44, %v717_v43  ;;  %v1868_v40 = vmul.f32 0.00390625, %v966_v31 }
 0x159   :  { %v801_v45 = vmax.f32 %v799_v33, 0.0  ;;  %v728_v0 = vmul.f32 %v724_v47, %v721_v58  ;;  %v729_v23 = vmul.f32 %v725_v50, %v721_v58  ;;  %v943_v47 = vperm.slane %v1866_v57, 1 }
 0x15a   :  { %v839_v4 = vmul.f32 %v835_v53, %v828_v42  ;;  %v840_v56 = vmul.f32 %v836_v37, %v829_v20  ;;  %vm906_vm7 = vweird.f32 %v1805_v25  ;;  %v1017_v17 = vsub.f32 %v1686_v63, %v1868_v40 }
 0x15b   :  { %v1832_v59 = vadd.f32 1e-05, %v801_v45  ;;  %v739_v44 = vmul.f32 %v733_v9, %v728_v0  ;;  %v740_v19 = vmul.f32 %v734_v12, %v729_v23  ;;  %v1858_v9 = vld [vmem:[#allocation7 + $0x11] ss:$4 sm:$0x3]  ;;  %v942_v45 = vperm.slane %v1866_v57, 0 }
 0x15c   :  { %v875_v49 = vpop.xlane.xlu2 %874  ;;  %v850_v14 = vadd.f32 %v846_v6, %v839_v4  ;;  %v851_v16 = vadd.f32 %v847_v34, %v840_v56  ;;  %v931_v31 = vperm.slane %v1858_v9, 0  ;;  %v932_v43 = vperm.slane %v1858_v9, 1  ;;  %v1887_v56 = vld [vmem:[#allocation8 + $0x4] sm:$0x3] }
 0x15d   :  { %v971_v39 = vpop.xlane.xlu1 %970  ;;  %v1420_v13 = vpop.eup %1419  ;;  %1421 = vrsqrt.f32 %v1832_v59  ;;  %v750_v12 = vadd.f32 %v744_v18, %v739_v44  ;;  %v751_v30 = vadd.f32 %v745_v24, %v740_v19  ;;  %v1870_v42 = vmul.f32 0.00390625, %v875_v49 }
 0x15e   :  { %v901_v2 = vmul.f32 %v1420_v13, %v1805_v25  ;;  %v860_v52 = vsel %vm1775_vm11, %v856_v27, %v850_v14  ;;  %v861_v26 = vsel %vm1775_vm11, %v857_v54, %v851_v16  ;;  %v1860_v60 = vmul.f32 0.00390625, %v971_v39 }
 0x15f   :  { %v985_v22 = vpop.xlane.xlu0 %984  ;;  %864 = vst [vmem:[#allocation10 + $0x10] sm:$0xff] %v860_v52  ;;  %v766_v20 = vsel %vm1854_vm5, %v760_v10, %v750_v12  ;;  %v767_v1 = vsel %vm1854_vm5, %v761_v61, %v751_v30  ;;  %vm907_vm6 = vweird.f32 %v1420_v13  ;;  %v893_v21 = vmul.f32 %v1870_v42, %v1870_v42 }
 0x160   :  { %v902_v33 = vmul.f32 %v1420_v13, %v901_v2  ;;  %v987_v38 = vmul.f32 0.00390625, %v985_v22  ;;  %865 = vst [vmem:[#allocation10 + $0x18] sm:$0xff] %v861_v26  ;;  %v989_v24 = vmul.f32 %v1860_v60, %v1860_v60  ;;  %v988_v23 = vmul.f32 %v1868_v40, %v1868_v40  ;;  %vm908_vm8 = vmor %vm906_vm7, %vm907_vm6 }
 0x161   :  { %770 = vst [vmem:[#allocation10 + $0x40] sm:$0x3] %v766_v20  ;;  %v920_v16 = vsub.f32 %v1666_v46, %v1766_v28  ;;  %v921_v44 = vsub.f32 %v1668_v48, %v1766_v28  ;;  %v952_v22 = vperm.slane %v1887_v56, 0  ;;  %v953_v20 = vperm.slane %v1887_v56, 1 }
 0x162   :  { %v903_v18 = vmul.f32 0.5, %v902_v33  ;;  %771 = vst [vmem:[#allocation10 + $0x48] sm:$0x3] %v767_v1  ;;  %v991_v61 = vsub.f32 %v987_v38, %v989_v24  ;;  %vm820_vm10 = vweird.f32 %v1832_v59 }
 0x163   :  { %v1422_v29 = vpop.eup %1421 }
 0x164   :  { %v904_v10 = vsub.f32 1.5, %v903_v18  ;;  %v815_v15 = vmul.f32 %v1422_v29, %v1832_v59  ;;  %v980_v4 = vpop.xlane.xlu2 %979  ;;  %v993_v14 = vmax.f32 %v991_v61, 0.0  ;;  %vm821_vm9 = vweird.f32 %v1422_v29 }
 0x165   :  { %v889_v50 = vpop.xlane.xlu1 %888  ;;  %v986_v0 = vmul.f32 0.00390625, %v980_v4  ;;  %v826_v18 = vsub.f32 %v1654_v35, %v1789_v55  ;;  %vm822_vm12 = vmor %vm820_vm10, %vm821_vm9 }
 0x166   :  { %v891_v58 = vmul.f32 0.00390625, %v889_v50  ;;  %v905_v39 = vmul.f32 %v1420_v13, %v904_v10  ;;  %v816_v49 = vmul.f32 %v1422_v29, %v815_v15  ;;  %v1900_v12 = vadd.f32 1e-05, %v993_v14 }
 0x167   :  { %v990_v2 = vsub.f32 %v986_v0, %v988_v23  ;;  %v827_v10 = vsub.f32 %v1656_v36, %v1789_v55 }
 0x168   :  { %v895_v19 = vsub.f32 %v891_v58, %v893_v21  ;;  %v909_v52 = vsel %vm908_vm8, %v1420_v13, %v905_v39  ;;  %v817_v26 = vmul.f32 0.5, %v816_v49  ;;  %1423 = vrsqrt.f32 %v1900_v12  ;;  %v1025_v49 = vld [vmem:[#allocation7 + $0x19] ss:$4 sm:$0x3] }
 0x169   :  { %v924_v30 = vmul.f32 %v920_v16, %v909_v52  ;;  %v925_v25 = vmul.f32 %v921_v44, %v909_v52  ;;  %v992_v38 = vmax.f32 %v990_v2, 0.0  ;;  %v1028_v2 = vperm.slane %v1025_v49, 1 }
 0x16a   :  { %v897_v33 = vmax.f32 %v895_v19, 0.0  ;;  %v818_v46 = vsub.f32 1.5, %v817_v26  ;;  %vm1012_vm14 = vweird.f32 %v1900_v12 }
 0x16b   :  { %v935_v48 = vmul.f32 %v931_v31, %v924_v30  ;;  %v936_v28 = vmul.f32 %v932_v43, %v925_v25  ;;  %v1910_v1 = vadd.f32 1e-05, %v992_v38  ;;  %v1046_v30 = vld [vmem:[#allocation8 + $0x6] sm:$0x3] }
 0x16c   :  { %v1908_v13 = vadd.f32 1e-05, %v897_v33  ;;  %v819_v24 = vmul.f32 %v1422_v29, %v818_v46  ;;  %v1048_v63 = vperm.slane %v1046_v30, 0 }
 0x16d   :  { %v946_v15 = vadd.f32 %v942_v45, %v935_v48  ;;  %v947_v61 = vadd.f32 %v943_v47, %v936_v28  ;;  %v1018_v48 = vsub.f32 %v1694_v7, %v1860_v60  ;;  %v1019_v28 = vsub.f32 %v1696_v11, %v1860_v60 }
 0x16e   :  { %1425 = vrsqrt.f32 %v1908_v13  ;;  %v823_v50 = vsel %vm822_vm12, %v1422_v29, %v819_v24  ;;  %v1424_v4 = vpop.eup %1423  ;;  %vm916_vm2 = vweird.f32 %v1908_v13  ;;  %v923_v7 = vsub.f32 %v1690_v5, %v1870_v42 }
 0x16f   :  { %1427 = vrsqrt.f32 %v1910_v1  ;;  %v956_v35 = vsel %vm1775_vm11, %v952_v22, %v946_v15  ;;  %v957_v36 = vsel %vm1775_vm11, %v953_v20, %v947_v61  ;;  %v830_v55 = vmul.f32 %v826_v18, %v823_v50 }
 0x170   :  { %v831_v59 = vmul.f32 %v827_v10, %v823_v50  ;;  %960 = vst [vmem:[#allocation10 + $0x20] sm:$0xff] %v956_v35  ;;  %v1007_v21 = vmul.f32 %v1424_v4, %v1900_v12  ;;  %vm1013_vm13 = vweird.f32 %v1424_v4  ;;  %v922_v12 = vsub.f32 %v1688_v3, %v1870_v42 }
 0x171   :  { %961 = vst [vmem:[#allocation10 + $0x28] sm:$0xff] %v957_v36  ;;  %v841_v29 = vmul.f32 %v835_v53, %v830_v55  ;;  %vm1014_vm15 = vmor %vm1012_vm14, %vm1013_vm13  ;;  %vm1002_vm4 = vweird.f32 %v1910_v1  ;;  %v1049_v60 = vperm.slane %v1046_v30, 1 }
 0x172   :  { %v842_v58 = vmul.f32 %v836_v37, %v831_v59  ;;  %v1008_v14 = vmul.f32 %v1424_v4, %v1007_v21  ;;  %v1949_v37 = vld [vmem:[#allocation7 + $0x1a] ss:$4 sm:$0x3] }
 0x173   :  { %v852_v23 = vadd.f32 %v846_v6, %v841_v29  ;;  %v1039_v33 = vperm.slane %v1949_v37, 1 }
 0x174   :  { %v1426_v0 = vpop.eup %1425  ;;  %v853_v39 = vadd.f32 %v847_v34, %v842_v58  ;;  %v1009_v6 = vmul.f32 0.5, %v1008_v14  ;;  %v1027_v34 = vperm.slane %v1025_v49, 0 }
 0x175   :  { %v1428_v16 = vpop.eup %1427  ;;  %v911_v44 = vmul.f32 %v1426_v0, %v1908_v13  ;;  %v862_v32 = vsel %vm1854_vm5, %v856_v27, %v852_v23  ;;  %v1016_v27 = vsub.f32 %v1684_v62, %v1868_v40  ;;  %vm917_vm0 = vweird.f32 %v1426_v0 }
 0x176   :  { %v863_v53 = vsel %vm1854_vm5, %v857_v54, %v853_v39  ;;  %v997_v51 = vmul.f32 %v1428_v16, %v1910_v1  ;;  %866 = vst [vmem:[#allocation10 + $0x50] sm:$0x3] %v862_v32  ;;  %v1010_v52 = vsub.f32 1.5, %v1009_v6  ;;  %v1038_v54 = vperm.slane %v1949_v37, 0  ;;  %vm918_vm3 = vmor %vm916_vm2, %vm917_vm0 }
 0x177   :  { %v912_v19 = vmul.f32 %v1426_v0, %v911_v44  ;;  %867 = vst [vmem:[#allocation10 + $0x58] sm:$0x3] %v863_v53  ;;  %vm1003_vm1 = vweird.f32 %v1428_v16 }
 0x178   :  { %v998_v26 = vmul.f32 %v1428_v16, %v997_v51  ;;  %v1011_v38 = vmul.f32 %v1424_v4, %v1010_v52  ;;  %vm1004_vm6 = vmor %vm1002_vm4, %vm1003_vm1 }
 0x179   :  { %v913_v25 = vmul.f32 0.5, %v912_v19 }
 0x17a   :  { %v999_v46 = vmul.f32 0.5, %v998_v26  ;;  %v1015_v40 = vsel %vm1014_vm15, %v1424_v4, %v1011_v38 }
 0x17b   :  { %v914_v62 = vsub.f32 1.5, %v913_v25  ;;  %v1022_v24 = vmul.f32 %v1018_v48, %v1015_v40  ;;  %v1023_v10 = vmul.f32 %v1019_v28, %v1015_v40 }
 0x17c   :  { %v1000_v18 = vsub.f32 1.5, %v999_v46 }
 0x17d   :  { %v915_v15 = vmul.f32 %v1426_v0, %v914_v62  ;;  %v1033_v61 = vmul.f32 %v1027_v34, %v1022_v24  ;;  %v1034_v50 = vmul.f32 %v1028_v2, %v1023_v10 }
 0x17e   :  { %v1001_v11 = vmul.f32 %v1428_v16, %v1000_v18 }
 0x17f   :  { %v919_v35 = vsel %vm918_vm3, %v1426_v0, %v915_v15  ;;  %v1044_v4 = vadd.f32 %v1038_v54, %v1033_v61  ;;  %v1045_v13 = vadd.f32 %v1039_v33, %v1034_v50 }
 0x180   :  { %v926_v36 = vmul.f32 %v922_v12, %v919_v35  ;;  %v927_v55 = vmul.f32 %v923_v7, %v919_v35  ;;  %v1005_v59 = vsel %vm1004_vm6, %v1428_v16, %v1001_v11 }
 0x181   :  { %v1020_v29 = vmul.f32 %v1016_v27, %v1005_v59  ;;  %v1021_v58 = vmul.f32 %v1017_v17, %v1005_v59  ;;  %v1054_v42 = vsel %vm1854_vm5, %v1048_v63, %v1044_v4  ;;  %v1055_v1 = vsel %vm1854_vm5, %v1049_v60, %v1045_v13 }
 0x182   :  { %v937_v3 = vmul.f32 %v931_v31, %v926_v36  ;;  %v938_v5 = vmul.f32 %v932_v43, %v927_v55  ;;  %1058 = vst [vmem:[#allocation10 + $0x70] sm:$0x3] %v1054_v42 }
 0x183   :  { %v1031_v21 = vmul.f32 %v1027_v34, %v1020_v29  ;;  %v1032_v0 = vmul.f32 %v1028_v2, %v1021_v58  ;;  %1059 = vst [vmem:[#allocation10 + $0x78] sm:$0x3] %v1055_v1 }
 0x184   :  { %v948_v23 = vadd.f32 %v942_v45, %v937_v3  ;;  %v949_v39 = vadd.f32 %v943_v47, %v938_v5 }
 0x185   :  { %v1042_v9 = vadd.f32 %v1038_v54, %v1031_v21  ;;  %v1043_v31 = vadd.f32 %v1039_v33, %v1032_v0 }
 0x186   :  { %v958_v43 = vsel %vm1854_vm5, %v952_v22, %v948_v23  ;;  %v959_v57 = vsel %vm1854_vm5, %v953_v20, %v949_v39 }
 0x187   :  { %962 = vst [vmem:[#allocation10 + $0x60] sm:$0x3] %v958_v43  ;;  %v1052_v45 = vsel %vm1775_vm11, %v1048_v63, %v1042_v9  ;;  %v1053_v47 = vsel %vm1775_vm11, %v1049_v60, %v1043_v31 }
 0x188   :  { %963 = vst [vmem:[#allocation10 + $0x68] sm:$0x3] %v959_v57 }
 0x189   :  { %1056 = vst [vmem:[#allocation10 + $0x30] sm:$0xff] %v1052_v45 }
 0x18a   :  { %1057 = vst [vmem:[#allocation10 + $0x38] sm:$0xff] %v1053_v47 }
 0x18b   :  { %1072 = dma.vmem_to_hbm [thread:$0]  %s1065_s3, 2048, %s1067_s13, [#allocation4], %s1567_s4, %s1567_s4, %s1568_s14  }
 0x18c   :  { %1555 = dma.done.wait [#allocation4], 2048  }
 0x18d   :  { %1556 = vsyncadd [#allocation4], 4294965248 }
 0x18e   :  { %1077 = vsyncpa [#allocation3], 1 }
 0x18f   :  { %1078 = vsyncpa [#allocation6], 1 }
 0x190   :  { %1079 = vsyncpa [#allocation9], 1 }
 0x191   :  { %1080 = vsyncpa [#allocation4], 1 }

// kernel: tpu_custom_call.1
= control target key start
LH: loop header
LB: loop body
LE: loop exit
PB: predicated region body
PF: predicated region fallthrough
CT: control target
= control target key end

     0   :  { %9 = vsyncpa [#allocation3], 0  ;;  %s1996_s0 = inlined_call_operand.hbm [shape: f32[10,128], index: 0, kind: input, shape index: {}]   ;;  %s1997_s1 = inlined_call_operand.hbm [shape: bf16[128,1024], index: 1, kind: input, shape index: {}]   ;;  %s1998_s2 = inlined_call_operand.hbm [shape: f32[3,1024], index: 2, kind: input, shape index: {}]   ;;  %s1999_s3 = inlined_call_operand.hbm [shape: f32[1,1024], index: 3, kind: input, shape index: {}]   ;;  %s2000_s4 = inlined_call_operand.hbm [shape: f32[10,1024], index: 4, kind: output, shape index: {}]  }
   0x1   :  { %10 = vsyncpa [#allocation6], 0 }
   0x2   :  { %11 = vsyncpa [#allocation9], 0  ;;  %s30_s17 = sshll.u32 %s1997_s1, 4  ;;  %s31_s17 = int_to_ptr.hbm [resolvable:$true] %s30_s17 }
   0x3   :  { %12 = vsyncpa [#allocation4], 0  ;;  %s1557_s18 = smov [#allocation5]   ;;  %s17_s22 = sshll.u32 %s1996_s0, 4  ;;  %s18_s22 = int_to_ptr.hbm [resolvable:$true] %s17_s22 }
   0x4   :  { %s32_s19 = sshll.u32 %s1557_s18, 4  ;;  %s1558_s23 = smov 512   ;;  %s33_s19 = int_to_ptr.vmem [resolvable:$true] %s32_s19 }
   0x5   :  { %s1559_s24 = smov 32   ;;  %s1560_s25 = smov [#allocation2]  }
   0x6   :  { %38 = dma.hbm_to_vmem [thread:$0]  %s31_s17, 8192, %s33_s19, [#allocation6], %s1558_s23, %s1558_s23, %s1559_s24  }
   0x7   :  { %s19_s26 = sshll.u32 %s1560_s25, 4  ;;  %s1561_s27 = smov 128   ;;  %s20_s26 = int_to_ptr.vmem [resolvable:$true] %s19_s26 }
   0x8   :  { %s1562_s28 = smov 8   ;;  %s44_s30 = sshll.u32 %s1998_s2, 4  ;;  %s45_s30 = int_to_ptr.hbm [resolvable:$true] %s44_s30 }
   0x9   :  { %25 = dma.hbm_to_vmem [thread:$0]  %s18_s22, 256, %s20_s26, [#allocation3], %s1561_s27, %s1561_s27, %s1562_s28  }
   0xa   :  { %s1563_s5 = smov [#allocation7]   ;;  %s55_s8 = sshll.u32 %s1999_s3, 4  ;;  %s56_s8 = int_to_ptr.hbm [resolvable:$true] %s55_s8 }
   0xb   :  { %s46_s6 = sshll.u32 %s1563_s5, 4  ;;  %s1564_s9 = smov [#allocation8]   ;;  %s47_s6 = int_to_ptr.vmem [resolvable:$true] %s46_s6 }
   0xc   :  { %49 = dma.hbm_to_vmem [thread:$0]  %s45_s30, 512, %s47_s6, [#allocation6]  }
   0xd   :  { %s57_s10 = sshll.u32 %s1564_s9, 4  ;;  %s58_s10 = int_to_ptr.vmem [resolvable:$true] %s57_s10 }
   0xe   :  { %60 = dma.hbm_to_vmem [thread:$0]  %s56_s8, 128, %s58_s10, [#allocation9]  }
   0xf   :  { %1549 = dma.done.wait [#allocation3], 256  }
  0x10   :  { %1550 = vsyncadd [#allocation3], 4294967040 }
  0x11   :  { %1551 = dma.done.wait [#allocation6], 8704  }
  0x12   :  { %1552 = vsyncadd [#allocation6], 4294958592 }
  0x13   :  { %1553 = dma.done.wait [#allocation9], 128  }
  0x14   :  { %1554 = vsyncadd [#allocation9], 4294967168  ;;  %v1307_v0 = vld [vmem:[#allocation5 + $0x1c0] sm:$0xf]  ;;  %v1393_v2 = vld [vmem:[#allocation5 + $0x1c4] sm:$0xf] }
  0x15   :  { %v1397_v1 = vld [vmem:[#allocation5 + $0x1dc] sm:$0xf0]  ;;  %v1309_v4 = vld [vmem:[#allocation5 + $0x1e0] sm:$0xf0]  ;;  %v1315_v5 = vld [vmem:[#allocation5 + $0x1c8] sm:$0xf] }
  0x16   :  { %v1308_v3 = vor.u32 %v1397_v1, %v1307_v0  ;;  %v1398_v6 = vld [vmem:[#allocation5 + $0x1e4] sm:$0xf0]  ;;  %v1312_v7 = vor.u32 %v1393_v2, %v1309_v4  ;;  %v1394_v9 = vld [vmem:[#allocation5 + $0x1cc] sm:$0xf]  ;;  %v1275_v11 = vld [vmem:[#allocation5 + $0x180] sm:$0xf] }
  0x17   :  { %v1316_v8 = vor.u32 %v1398_v6, %v1315_v5  ;;  %v1317_v10 = vld [vmem:[#allocation5 + $0x1e8] sm:$0xf0]  ;;  %v1389_v13 = vld [vmem:[#allocation5 + $0x19c] sm:$0xf0]  ;;  %v1385_v14 = vld [vmem:[#allocation5 + $0x184] sm:$0xf] }
  0x18   :  { %482 = vmatpush.bf16.msra.mxu0 %v1308_v3  ;;  %v1320_v12 = vor.u32 %v1394_v9, %v1317_v10  ;;  %v1277_v15 = vld [vmem:[#allocation5 + $0x1a0] sm:$0xf0]  ;;  %496 = vmatpush.bf16.msra.mxu1 %v1312_v7  ;;  %v1276_v16 = vor.u32 %v1389_v13, %v1275_v11  ;;  %v1283_v18 = vld [vmem:[#allocation5 + $0x188] sm:$0xf]  ;;  %v1386_v20 = vld [vmem:[#allocation5 + $0x18c] sm:$0xf] }
  0x19   :  { %510 = vmatpush.bf16.msra.mxu2 %v1316_v8  ;;  %v1280_v17 = vor.u32 %v1385_v14, %v1277_v15  ;;  %v1390_v19 = vld [vmem:[#allocation5 + $0x1a4] sm:$0xf0]  ;;  %v1285_v22 = vld [vmem:[#allocation5 + $0x1a8] sm:$0xf0]  ;;  %v1243_v23 = vld [vmem:[#allocation5 + $0x140] sm:$0xf] }
  0x1a   :  { %524 = vmatpush.bf16.msra.mxu3 %v1320_v12  ;;  %v1284_v21 = vor.u32 %v1390_v19, %v1283_v18  ;;  %v1381_v24 = vld [vmem:[#allocation5 + $0x15c] sm:$0xf0]  ;;  %v1288_v25 = vor.u32 %v1386_v20, %v1285_v22  ;;  %v1377_v26 = vld [vmem:[#allocation5 + $0x144] sm:$0xf]  ;;  %v1251_v28 = vld [vmem:[#allocation5 + $0x148] sm:$0xf] }
  0x1b   :  { %v1245_v27 = vld [vmem:[#allocation5 + $0x160] sm:$0xf0]  ;;  %v1244_v29 = vor.u32 %v1381_v24, %v1243_v23  ;;  %v1382_v30 = vld [vmem:[#allocation5 + $0x164] sm:$0xf0]  ;;  %v1378_v31 = vld [vmem:[#allocation5 + $0x14c] sm:$0xf] }
  0x1c   :  { %483 = vmatpush.bf16.msra.mxu0 %v1276_v16  ;;  %v1253_v32 = vld [vmem:[#allocation5 + $0x168] sm:$0xf0]  ;;  %497 = vmatpush.bf16.msra.mxu1 %v1280_v17  ;;  %v1248_v33 = vor.u32 %v1377_v26, %v1245_v27  ;;  %v1252_v34 = vor.u32 %v1382_v30, %v1251_v28  ;;  %v1211_v35 = vld [vmem:[#allocation5 + $0x100] sm:$0xf]  ;;  %v1369_v37 = vld [vmem:[#allocation5 + $0x104] sm:$0xf] }
  0x1d   :  { %511 = vmatpush.bf16.msra.mxu2 %v1284_v21  ;;  %v1373_v36 = vld [vmem:[#allocation5 + $0x11c] sm:$0xf0]  ;;  %v1256_v38 = vor.u32 %v1378_v31, %v1253_v32  ;;  %v1213_v39 = vld [vmem:[#allocation5 + $0x120] sm:$0xf0]  ;;  %v1219_v40 = vld [vmem:[#allocation5 + $0x108] sm:$0xf] }
  0x1e   :  { %525 = vmatpush.bf16.msra.mxu3 %v1288_v25  ;;  %v1374_v41 = vld [vmem:[#allocation5 + $0x124] sm:$0xf0]  ;;  %v1370_v42 = vld [vmem:[#allocation5 + $0x10c] sm:$0xf]  ;;  %v1212_v44 = vor.u32 %v1373_v36, %v1211_v35  ;;  %v1216_v45 = vor.u32 %v1369_v37, %v1213_v39  ;;  %v1179_v47 = vld [vmem:[#allocation5 + $0xc0] sm:$0xf] }
  0x1f   :  { %v1221_v43 = vld [vmem:[#allocation5 + $0x128] sm:$0xf0]  ;;  %v1220_v46 = vor.u32 %v1374_v41, %v1219_v40  ;;  %v1365_v48 = vld [vmem:[#allocation5 + $0xdc] sm:$0xf0]  ;;  %v1361_v49 = vld [vmem:[#allocation5 + $0xc4] sm:$0xf] }
  0x20   :  { %484 = vmatpush.bf16.msra.mxu0 %v1244_v29  ;;  %498 = vmatpush.bf16.msra.mxu1 %v1248_v33  ;;  %v1224_v50 = vor.u32 %v1370_v42, %v1221_v43  ;;  %v1181_v51 = vld [vmem:[#allocation5 + $0xe0] sm:$0xf0]  ;;  %v1187_v52 = vld [vmem:[#allocation5 + $0xc8] sm:$0xf]  ;;  %v1362_v54 = vld [vmem:[#allocation5 + $0xcc] sm:$0xf]  ;;  %v1180_v56 = vor.u32 %v1365_v48, %v1179_v47 }
  0x21   :  { %512 = vmatpush.bf16.msra.mxu2 %v1252_v34  ;;  %v1366_v53 = vld [vmem:[#allocation5 + $0xe4] sm:$0xf0]  ;;  %v1189_v55 = vld [vmem:[#allocation5 + $0xe8] sm:$0xf0]  ;;  %v1184_v57 = vor.u32 %v1361_v49, %v1181_v51  ;;  %v1147_v59 = vld [vmem:[#allocation5 + $0x80] sm:$0xf] }
  0x22   :  { %526 = vmatpush.bf16.msra.mxu3 %v1256_v38  ;;  %v1188_v58 = vor.u32 %v1366_v53, %v1187_v52  ;;  %v1357_v60 = vld [vmem:[#allocation5 + $0x9c] sm:$0xf0]  ;;  %v1353_v61 = vld [vmem:[#allocation5 + $0x84] sm:$0xf]  ;;  %v1192_v62 = vor.u32 %v1362_v54, %v1189_v55  ;;  %v1155_v0 = vld [vmem:[#allocation5 + $0x88] sm:$0xf] }
  0x23   :  { %v1149_v63 = vld [vmem:[#allocation5 + $0xa0] sm:$0xf0]  ;;  %v1358_v1 = vld [vmem:[#allocation5 + $0xa4] sm:$0xf0]  ;;  %v1354_v2 = vld [vmem:[#allocation5 + $0x8c] sm:$0xf]  ;;  %v1148_v4 = vor.u32 %v1357_v60, %v1147_v59 }
  0x24   :  { %485 = vmatpush.bf16.msra.mxu0 %v1212_v44  ;;  %499 = vmatpush.bf16.msra.mxu1 %v1216_v45  ;;  %v1157_v3 = vld [vmem:[#allocation5 + $0xa8] sm:$0xf0]  ;;  %v1152_v5 = vor.u32 %v1353_v61, %v1149_v63  ;;  %v1156_v6 = vor.u32 %v1358_v1, %v1155_v0  ;;  %v1115_v7 = vld [vmem:[#allocation5 + $0x40] sm:$0xf]  ;;  %v1345_v9 = vld [vmem:[#allocation5 + $0x44] sm:$0xf] }
  0x25   :  { %513 = vmatpush.bf16.msra.mxu2 %v1220_v46  ;;  %v1349_v8 = vld [vmem:[#allocation5 + $0x5c] sm:$0xf0]  ;;  %v1160_v10 = vor.u32 %v1354_v2, %v1157_v3  ;;  %v1117_v11 = vld [vmem:[#allocation5 + $0x60] sm:$0xf0]  ;;  %v1123_v12 = vld [vmem:[#allocation5 + $0x48] sm:$0xf] }
  0x26   :  { %527 = vmatpush.bf16.msra.mxu3 %v1224_v50  ;;  %v1350_v13 = vld [vmem:[#allocation5 + $0x64] sm:$0xf0]  ;;  %v1346_v14 = vld [vmem:[#allocation5 + $0x4c] sm:$0xf]  ;;  %v1116_v16 = vor.u32 %v1349_v8, %v1115_v7  ;;  %v1083_v17 = vld [vmem:[#allocation5] sm:$0xf]  ;;  %v1120_v20 = vor.u32 %v1345_v9, %v1117_v11 }
  0x27   :  { %v1125_v15 = vld [vmem:[#allocation5 + $0x68] sm:$0xf0]  ;;  %v1341_v18 = vld [vmem:[#allocation5 + $0x1c] sm:$0xf0]  ;;  %v1337_v19 = vld [vmem:[#allocation5 + $0x4] sm:$0xf]  ;;  %v1124_v21 = vor.u32 %v1350_v13, %v1123_v12 }
  0x28   :  { %486 = vmatpush.bf16.msra.mxu0 %v1180_v56  ;;  %500 = vmatpush.bf16.msra.mxu1 %v1184_v57  ;;  %v1085_v22 = vld [vmem:[#allocation5 + $0x20] sm:$0xf0]  ;;  %v1091_v23 = vld [vmem:[#allocation5 + $0x8] sm:$0xf]  ;;  %v1128_v25 = vor.u32 %v1346_v14, %v1125_v15  ;;  %v1338_v26 = vld [vmem:[#allocation5 + $0xc] sm:$0xf]  ;;  %v1084_v32 = vor.u32 %v1341_v18, %v1083_v17 }
  0x29   :  { %514 = vmatpush.bf16.msra.mxu2 %v1188_v58  ;;  %v1342_v24 = vld [vmem:[#allocation5 + $0x24] sm:$0xf0]  ;;  %v1093_v27 = vld [vmem:[#allocation5 + $0x28] sm:$0xf0]  ;;  %v1323_v28 = vld [vmem:[#allocation5 + $0x1d0] sm:$0xf]  ;;  %v1088_v36 = vor.u32 %v1337_v19, %v1085_v22 }
  0x2a   :  { %528 = vmatpush.bf16.msra.mxu3 %v1192_v62  ;;  %v1399_v29 = vld [vmem:[#allocation5 + $0x1ec] sm:$0xf0]  ;;  %v1395_v30 = vld [vmem:[#allocation5 + $0x1d4] sm:$0xf]  ;;  %v1331_v33 = vld [vmem:[#allocation5 + $0x1d8] sm:$0xf]  ;;  %v1092_v37 = vor.u32 %v1342_v24, %v1091_v23  ;;  %v1096_v41 = vor.u32 %v1338_v26, %v1093_v27 }
  0x2b   :  { %v1325_v31 = vld [vmem:[#allocation5 + $0x1f0] sm:$0xf0]  ;;  %v1400_v34 = vld [vmem:[#allocation5 + $0x1f4] sm:$0xf0]  ;;  %v1396_v35 = vld [vmem:[#allocation5 + $0x1dc] sm:$0xf]  ;;  %v1324_v42 = vor.u32 %v1399_v29, %v1323_v28 }
  0x2c   :  { %487 = vmatpush.bf16.msra.mxu0 %v1148_v4  ;;  %501 = vmatpush.bf16.msra.mxu1 %v1152_v5  ;;  %v1333_v38 = vld [vmem:[#allocation5 + $0x1f8] sm:$0xf0]  ;;  %v77_v39 = vld [vmem:[#allocation2] sm:$0xff]  ;;  %v78_v40 = vld [vmem:[#allocation2 + $0x8] sm:$0x3]  ;;  %v1328_v43 = vor.u32 %v1395_v30, %v1325_v31  ;;  %v1332_v44 = vor.u32 %v1400_v34, %v1331_v33  ;;  %vm672_vm0 = vcmask 1041408  }
  0x2d   :  { %515 = vmatpush.bf16.msra.mxu2 %v1156_v6  ;;  %v1291_v45 = vld [vmem:[#allocation5 + $0x190] sm:$0xf]  ;;  %v1387_v47 = vld [vmem:[#allocation5 + $0x194] sm:$0xf]  ;;  %v1336_v48 = vor.u32 %v1396_v35, %v1333_v38  ;;  %v1606_v49 = vpack.c.bf16 %v78_v40, %v77_v39  ;;  %v1299_v51 = vld [vmem:[#allocation5 + $0x198] sm:$0xf] }
  0x2e   :  { %529 = vmatpush.bf16.msra.mxu3 %v1160_v10  ;;  %v1391_v46 = vld [vmem:[#allocation5 + $0x1ac] sm:$0xf0]  ;;  %v1293_v50 = vld [vmem:[#allocation5 + $0x1b0] sm:$0xf0]  ;;  %v1392_v52 = vld [vmem:[#allocation5 + $0x1b4] sm:$0xf0] }
  0x2f   :  { %v1388_v53 = vld [vmem:[#allocation5 + $0x19c] sm:$0xf]  ;;  %v1292_v55 = vor.u32 %v1391_v46, %v1291_v45  ;;  %v1296_v56 = vor.u32 %v1387_v47, %v1293_v50  ;;  %v1300_v57 = vor.u32 %v1392_v52, %v1299_v51  ;;  %v1259_v58 = vld [vmem:[#allocation5 + $0x150] sm:$0xf]  ;;  %v1379_v60 = vld [vmem:[#allocation5 + $0x154] sm:$0xf] }
  0x30   :  { %488 = vmatpush.bf16.msra.mxu0 %v1116_v16  ;;  %502 = vmatpush.bf16.msra.mxu1 %v1120_v20  ;;  %v1301_v54 = vld [vmem:[#allocation5 + $0x1b8] sm:$0xf0]  ;;  %v1383_v59 = vld [vmem:[#allocation5 + $0x16c] sm:$0xf0]  ;;  %v1261_v62 = vld [vmem:[#allocation5 + $0x170] sm:$0xf0] }
  0x31   :  { %516 = vmatpush.bf16.msra.mxu2 %v1124_v21  ;;  %v1304_v61 = vor.u32 %v1388_v53, %v1301_v54  ;;  %v1267_v63 = vld [vmem:[#allocation5 + $0x158] sm:$0xf]  ;;  %v1380_v1 = vld [vmem:[#allocation5 + $0x15c] sm:$0xf]  ;;  %v1260_v3 = vor.u32 %v1383_v59, %v1259_v58  ;;  %v1264_v4 = vor.u32 %v1379_v60, %v1261_v62  ;;  %v1227_v6 = vld [vmem:[#allocation5 + $0x110] sm:$0xf] }
  0x32   :  { %530 = vmatpush.bf16.msra.mxu3 %v1128_v25  ;;  %v1384_v0 = vld [vmem:[#allocation5 + $0x174] sm:$0xf0]  ;;  %v1269_v2 = vld [vmem:[#allocation5 + $0x178] sm:$0xf0]  ;;  %v1375_v7 = vld [vmem:[#allocation5 + $0x12c] sm:$0xf0] }
  0x33   :  { %v1268_v5 = vor.u32 %v1384_v0, %v1267_v63  ;;  %v1371_v8 = vld [vmem:[#allocation5 + $0x114] sm:$0xf]  ;;  %v1272_v9 = vor.u32 %v1380_v1, %v1269_v2  ;;  %v1235_v11 = vld [vmem:[#allocation5 + $0x118] sm:$0xf]  ;;  %v1372_v13 = vld [vmem:[#allocation5 + $0x11c] sm:$0xf]  ;;  %v1228_v15 = vor.u32 %v1375_v7, %v1227_v6 }
  0x34   :  { %489 = vmatpush.bf16.msra.mxu0 %v1084_v32  ;;  %503 = vmatpush.bf16.msra.mxu1 %v1088_v36  ;;  %v1229_v10 = vld [vmem:[#allocation5 + $0x130] sm:$0xf0]  ;;  %v1376_v12 = vld [vmem:[#allocation5 + $0x134] sm:$0xf0]  ;;  %v1237_v14 = vld [vmem:[#allocation5 + $0x138] sm:$0xf0] }
  0x35   :  { %517 = vmatpush.bf16.msra.mxu2 %v1092_v37  ;;  %v1232_v16 = vor.u32 %v1371_v8, %v1229_v10  ;;  %v1236_v17 = vor.u32 %v1376_v12, %v1235_v11  ;;  %v1195_v18 = vld [vmem:[#allocation5 + $0xd0] sm:$0xf]  ;;  %v1363_v20 = vld [vmem:[#allocation5 + $0xd4] sm:$0xf]  ;;  %v1240_v21 = vor.u32 %v1372_v13, %v1237_v14  ;;  %v1203_v23 = vld [vmem:[#allocation5 + $0xd8] sm:$0xf] }
  0x36   :  { %531 = vmatpush.bf16.msra.mxu3 %v1096_v41  ;;  %v1367_v19 = vld [vmem:[#allocation5 + $0xec] sm:$0xf0]  ;;  %v1197_v22 = vld [vmem:[#allocation5 + $0xf0] sm:$0xf0]  ;;  %v1368_v24 = vld [vmem:[#allocation5 + $0xf4] sm:$0xf0] }
  0x37   :  { %490 = vmatmul.bf16.vlgmr.msra.gmra.mxu0 %v1606_v49  ;;  %504 = vmatmul.bf16.vlgmr.msra.gmra.mxu1 %v1606_v49  ;;  %v1364_v25 = vld [vmem:[#allocation5 + $0xdc] sm:$0xf]  ;;  %v1196_v27 = vor.u32 %v1367_v19, %v1195_v18  ;;  %v1200_v28 = vor.u32 %v1363_v20, %v1197_v22  ;;  %v1204_v29 = vor.u32 %v1368_v24, %v1203_v23  ;;  %v1163_v30 = vld [vmem:[#allocation5 + $0x90] sm:$0xf]  ;;  %v1355_v32 = vld [vmem:[#allocation5 + $0x94] sm:$0xf] }
  0x38   :  { %538 = vmatpush.bf16.msrb.mxu0 %v1324_v42  ;;  %552 = vmatpush.bf16.msrb.mxu1 %v1328_v43  ;;  %v1205_v26 = vld [vmem:[#allocation5 + $0xf8] sm:$0xf0]  ;;  %v1359_v31 = vld [vmem:[#allocation5 + $0xac] sm:$0xf0]  ;;  %v1165_v34 = vld [vmem:[#allocation5 + $0xb0] sm:$0xf0] }
  0x39   :  { %566 = vmatpush.bf16.msrb.mxu2 %v1332_v44  ;;  %532 = vmatmul.bf16.vlgmr.msra.gmra.mxu3 %v1606_v49  ;;  %v1208_v33 = vor.u32 %v1364_v25, %v1205_v26  ;;  %v1171_v35 = vld [vmem:[#allocation5 + $0x98] sm:$0xf]  ;;  %v1356_v37 = vld [vmem:[#allocation5 + $0x9c] sm:$0xf]  ;;  %v1164_v39 = vor.u32 %v1359_v31, %v1163_v30  ;;  %v1168_v40 = vor.u32 %v1355_v32, %v1165_v34  ;;  %v1131_v42 = vld [vmem:[#allocation5 + $0x50] sm:$0xf] }
  0x3a   :  { %580 = vmatpush.bf16.msrb.mxu3 %v1336_v48  ;;  %518 = vmatmul.bf16.vlgmr.msra.gmra.mxu2 %v1606_v49  ;;  %v1360_v36 = vld [vmem:[#allocation5 + $0xb4] sm:$0xf0]  ;;  %v1173_v38 = vld [vmem:[#allocation5 + $0xb8] sm:$0xf0]  ;;  %v1351_v43 = vld [vmem:[#allocation5 + $0x6c] sm:$0xf0] }
  0x3b   :  { %v1172_v41 = vor.u32 %v1360_v36, %v1171_v35  ;;  %v1347_v44 = vld [vmem:[#allocation5 + $0x54] sm:$0xf]  ;;  %v1176_v45 = vor.u32 %v1356_v37, %v1173_v38  ;;  %v1139_v47 = vld [vmem:[#allocation5 + $0x58] sm:$0xf]  ;;  %v1348_v50 = vld [vmem:[#allocation5 + $0x5c] sm:$0xf]  ;;  %v1132_v52 = vor.u32 %v1351_v43, %v1131_v42 }
  0x3c   :  { %539 = vmatpush.bf16.msrb.mxu0 %v1292_v55  ;;  %553 = vmatpush.bf16.msrb.mxu1 %v1296_v56  ;;  %v1133_v46 = vld [vmem:[#allocation5 + $0x70] sm:$0xf0]  ;;  %v1352_v48 = vld [vmem:[#allocation5 + $0x74] sm:$0xf0]  ;;  %v1141_v51 = vld [vmem:[#allocation5 + $0x78] sm:$0xf0] }
  0x3d   :  { %567 = vmatpush.bf16.msrb.mxu2 %v1300_v57  ;;  %v1136_v53 = vor.u32 %v1347_v44, %v1133_v46  ;;  %v1140_v54 = vor.u32 %v1352_v48, %v1139_v47  ;;  %v1099_v55 = vld [vmem:[#allocation5 + $0x10] sm:$0xf]  ;;  %v1339_v57 = vld [vmem:[#allocation5 + $0x14] sm:$0xf]  ;;  %v1144_v58 = vor.u32 %v1348_v50, %v1141_v51  ;;  %v1107_v60 = vld [vmem:[#allocation5 + $0x18] sm:$0xf] }
  0x3e   :  { %581 = vmatpush.bf16.msrb.mxu3 %v1304_v61  ;;  %v1343_v56 = vld [vmem:[#allocation5 + $0x2c] sm:$0xf0]  ;;  %v1101_v59 = vld [vmem:[#allocation5 + $0x30] sm:$0xf0]  ;;  %v1344_v61 = vld [vmem:[#allocation5 + $0x34] sm:$0xf0] }
  0x3f   :  { %v1340_v62 = vld [vmem:[#allocation5 + $0x1c] sm:$0xf]  ;;  %v1100_v0 = vor.u32 %v1343_v56, %v1099_v55  ;;  %v1104_v1 = vor.u32 %v1339_v57, %v1101_v59  ;;  %v1108_v2 = vor.u32 %v1344_v61, %v1107_v60  ;;  %s1566_s2 = smov [#allocation10]   ;;  %s1066_s13 = sshll.u32 %s2000_s4, 4  ;;  %s1067_s13 = int_to_ptr.hbm [resolvable:$true] %s1066_s13 }
  0x40   :  { %540 = vmatpush.bf16.msrb.mxu0 %v1260_v3  ;;  %554 = vmatpush.bf16.msrb.mxu1 %v1264_v4  ;;  %v1109_v63 = vld [vmem:[#allocation5 + $0x38] sm:$0xf0]  ;;  %s1064_s3 = sshll.u32 %s1566_s2, 4  ;;  %s1567_s4 = smov 1024   ;;  %s1065_s3 = int_to_ptr.vmem [resolvable:$true] %s1064_s3 }
  0x41   :  { %568 = vmatpush.bf16.msrb.mxu2 %v1268_v5  ;;  %v1112_v3 = vor.u32 %v1340_v62, %v1109_v63  ;;  %v1616_v4 = vld [vmem:[#allocation7] ss:$4 sm:$0xff]  ;;  %s1568_s14 = smov 64  }
  0x42   :  { %582 = vmatpush.bf16.msrb.mxu3 %v1272_v9  ;;  %v146_v5 = vperm.slane %v1616_v4, 0  ;;  %v147_v6 = vperm.slane %v1616_v4, 1  ;;  %v149_v14 = vperm.slane %v1616_v4, 3  ;;  %v150_v43 = vperm.slane %v1616_v4, 4 }
  0x43   :  { %v151_v44 = vperm.slane %v1616_v4, 5  ;;  %v152_v55 = vperm.slane %v1616_v4, 6  ;;  %v153_v56 = vperm.slane %v1616_v4, 7 }
  0x44   :  { %541 = vmatpush.bf16.msrb.mxu0 %v1228_v15  ;;  %555 = vmatpush.bf16.msrb.mxu1 %v1232_v16 }
  0x45   :  { %569 = vmatpush.bf16.msrb.mxu2 %v1236_v17 }
  0x46   :  { %583 = vmatpush.bf16.msrb.mxu3 %v1240_v21 }
  0x48   :  { %542 = vmatpush.bf16.msrb.mxu0 %v1196_v27  ;;  %556 = vmatpush.bf16.msrb.mxu1 %v1200_v28 }
  0x49   :  { %570 = vmatpush.bf16.msrb.mxu2 %v1204_v29 }
  0x4a   :  { %584 = vmatpush.bf16.msrb.mxu3 %v1208_v33 }
  0x4c   :  { %543 = vmatpush.bf16.msrb.mxu0 %v1164_v39  ;;  %557 = vmatpush.bf16.msrb.mxu1 %v1168_v40 }
  0x4d   :  { %571 = vmatpush.bf16.msrb.mxu2 %v1172_v41 }
  0x4e   :  { %585 = vmatpush.bf16.msrb.mxu3 %v1176_v45 }
  0x50   :  { %544 = vmatpush.bf16.msrb.mxu0 %v1132_v52  ;;  %558 = vmatpush.bf16.msrb.mxu1 %v1136_v53 }
  0x51   :  { %572 = vmatpush.bf16.msrb.mxu2 %v1140_v54 }
  0x52   :  { %586 = vmatpush.bf16.msrb.mxu3 %v1144_v58 }
  0x54   :  { %545 = vmatpush.bf16.msrb.mxu0 %v1100_v0  ;;  %559 = vmatpush.bf16.msrb.mxu1 %v1104_v1 }
  0x55   :  { %573 = vmatpush.bf16.msrb.mxu2 %v1108_v2 }
  0x56   :  { %587 = vmatpush.bf16.msrb.mxu3 %v1112_v3 }
  0x57   :  { %546 = vmatmul.bf16.vlgmr.msrb.gmra.mxu0 %v1606_v49  ;;  %560 = vmatmul.bf16.vlgmr.msrb.gmra.mxu1 %v1606_v49 }
  0x58   :  { %574 = vmatmul.bf16.vlgmr.msrb.gmra.mxu2 %v1606_v49 }
  0x59   :  { %588 = vmatmul.bf16.vlgmr.msrb.gmra.mxu3 %v1606_v49  ;;  %v148_v49 = vperm.slane %v1616_v4, 2 }
  0xb4   :  { %v491_v7 = vpop.f32.mrf.mxu0  ;;  %v505_v9 = vpop.f32.mrf.mxu1 }
  0xb5   :  { %v1620_v8 = vadd.f32 %v491_v7, %v146_v5  ;;  %v1622_v10 = vadd.f32 %v505_v9, %v147_v6 }
  0xb7   :  { %v680_v11 = vmul.f32 %v1620_v8, %v1620_v8  ;;  %v669_v12 = vadd.f32 %v1622_v10, %v1620_v8  ;;  %v681_v13 = vmul.f32 %v1622_v10, %v1622_v10 }
  0xb9   :  { %670 = vadd.xlane.f32.xlu0 %v669_v12  ;;  %v684_v15 = vadd.f32 %v681_v13, %v680_v11 }
  0xbb   :  { %685 = vadd.xlane.f32.xlu2 %v684_v15 }
  0xbc   :  { %v533_v18 = vpop.f32.mrf.mxu3  ;;  %v493_v19 = vpop.f32.mrf.mxu0 }
  0xbd   :  { %v519_v16 = vpop.f32.mrf.mxu2  ;;  %v1634_v20 = vadd.f32 %v533_v18, %v149_v14  ;;  %v1636_v21 = vadd.f32 %v493_v19, %v146_v5  ;;  %v507_v22 = vpop.f32.mrf.mxu1 }
  0xbe   :  { %v1632_v17 = vadd.f32 %v519_v16, %v148_v49  ;;  %v1638_v23 = vadd.f32 %v507_v22, %v147_v6 }
  0xbf   :  { %v673_v25 = vsel %vm672_vm0, %v1636_v21, 0.0  ;;  %v783_v29 = vmul.f32 %v1634_v20, %v1634_v20  ;;  %v682_v30 = vmul.f32 %v1636_v21, %v1636_v21 }
  0xc0   :  { %v772_v24 = vadd.f32 %v1634_v20, %v1632_v17  ;;  %v674_v26 = vsel %vm672_vm0, %v1638_v23, 0.0  ;;  %v782_v28 = vmul.f32 %v1632_v17, %v1632_v17  ;;  %v683_v31 = vmul.f32 %v1638_v23, %v1638_v23 }
  0xc1   :  { %v675_v27 = vadd.f32 %v674_v26, %v673_v25  ;;  %v687_v37 = vsel %vm672_vm0, %v682_v30, 0.0 }
  0xc2   :  { %773 = vadd.xlane.f32.xlu1 %v772_v24  ;;  %v786_v34 = vadd.f32 %v783_v29, %v782_v28  ;;  %v688_v38 = vsel %vm672_vm0, %v683_v31, 0.0 }
  0xc3   :  { %676 = vadd.xlane.f32.xlu0 %v675_v27  ;;  %v689_v39 = vadd.f32 %v688_v38, %v687_v37 }
  0xc4   :  { %v535_v33 = vpop.f32.mrf.mxu3 }
  0xc5   :  { %v521_v32 = vpop.f32.mrf.mxu2  ;;  %v1656_v36 = vadd.f32 %v535_v33, %v149_v14 }
  0xc6   :  { %v1654_v35 = vadd.f32 %v521_v32, %v148_v49 }
  0xc7   :  { %v776_v41 = vsel %vm672_vm0, %v1656_v36, 0.0  ;;  %v785_v54 = vmul.f32 %v1656_v36, %v1656_v36 }
  0xc8   :  { %v775_v40 = vsel %vm672_vm0, %v1654_v35, 0.0  ;;  %v784_v53 = vmul.f32 %v1654_v35, %v1654_v35 }
  0xc9   :  { %v777_v42 = vadd.f32 %v776_v41, %v775_v40  ;;  %v790_v61 = vsel %vm672_vm0, %v785_v54, 0.0 }
  0xca   :  { %787 = vadd.xlane.f32.xlu1 %v786_v34  ;;  %v789_v60 = vsel %vm672_vm0, %v784_v53, 0.0  ;;  %v595_v34 = vlaneseq }
  0xcb   :  { %690 = vadd.xlane.f32.xlu0 %v689_v39  ;;  %v791_v2 = vadd.f32 %v790_v61, %v789_v60 }
  0xcc   :  { %v596_v37 = vshrl.u32 %v595_v34, 7 }
  0xce   :  { %v604_v38 = vand.u32 65535, %v596_v37  ;;  %v605_v39 = vshrl.u32 %v596_v37, 16 }
  0xd0   :  { %v608_v40 = vmul.u32 52428, %v604_v38  ;;  %v607_v41 = vmul.u32 52429, %v604_v38 }
  0xd2   :  { %778 = vadd.xlane.f32.xlu1 %v777_v42  ;;  %v609_v42 = vmul.u32 52429, %v605_v39 }
  0xd4   :  { %v547_v45 = vpop.f32.mrf.mxu0  ;;  %v561_v47 = vpop.f32.mrf.mxu1 }
  0xd5   :  { %v1666_v46 = vadd.f32 %v547_v45, %v150_v43  ;;  %v1668_v48 = vadd.f32 %v561_v47, %v151_v44  ;;  %v610_v47 = vmul.u32 52428, %v605_v39 }
  0xd7   :  { %v878_v50 = vmul.f32 %v1666_v46, %v1666_v46  ;;  %v868_v51 = vadd.f32 %v1668_v48, %v1666_v46  ;;  %v879_v52 = vmul.f32 %v1668_v48, %v1668_v48 }
  0xd9   :  { %869 = vadd.xlane.f32.xlu2 %v868_v51  ;;  %v882_v57 = vadd.f32 %v879_v52, %v878_v50  ;;  %v1565_v50 = vmov 0   ;;  %v1722_v52 = vadd.s32 8, %v596_v37 }
  0xdb   :  { %v575_v58 = vpop.f32.mrf.mxu2  ;;  %883 = vadd.xlane.f32.xlu0 %v882_v57  ;;  %v633_v53 = vand.u32 65535, %v1722_v52 }
  0xdc   :  { %v589_v59 = vpop.f32.mrf.mxu3  ;;  %v1684_v62 = vadd.f32 %v575_v58, %v152_v55  ;;  %v549_v0 = vpop.f32.mrf.mxu0  ;;  %v612_v58 = vshrl.u32 %v608_v40, 16 }
  0xdd   :  { %v1686_v63 = vadd.f32 %v589_v59, %v153_v56  ;;  %v563_v1 = vpop.f32.mrf.mxu1  ;;  %v1688_v3 = vadd.f32 %v549_v0, %v150_v43  ;;  %v611_v43 = vshll.u32 %v608_v40, 16  ;;  %v637_v57 = vmul.u32 52428, %v633_v53 }
  0xde   :  { %v1690_v5 = vadd.f32 %v563_v1, %v151_v44  ;;  %v974_v28 = vmul.f32 %v1684_v62, %v1684_v62  ;;  %v613_v44 = vshll.u32 %v609_v42, 16  ;;  %v636_v0 = vmul.u32 52429, %v633_v53 }
  0xdf   :  { %v964_v4 = vadd.f32 %v1686_v63, %v1684_v62  ;;  %v871_v12 = vsel %vm672_vm0, %v1688_v3, 0.0  ;;  %v880_v25 = vmul.f32 %v1688_v3, %v1688_v3  ;;  %v975_v29 = vmul.f32 %v1686_v63, %v1686_v63 }
  0xe0   :  { %v872_v49 = vsel %vm672_vm0, %v1690_v5, 0.0  ;;  %v881_v26 = vmul.f32 %v1690_v5, %v1690_v5  ;;  %vm615_vm1 = vc.u32 %v607_v41, %v611_v43  ;;  %v617_v45 = vadd.s32 %v611_v43, %v607_v41 }
  0xe1   :  { %792 = vadd.xlane.f32.xlu2 %v791_v2  ;;  %v873_v19 = vadd.f32 %v872_v49, %v871_v12  ;;  %v885_v30 = vsel %vm672_vm0, %v880_v25, 0.0  ;;  %v978_v33 = vadd.f32 %v975_v29, %v974_v28  ;;  %v616_v51 = vsel %vm615_vm1, 1, %v1565_v50 }
  0xe2   :  { %v886_v31 = vsel %vm672_vm0, %v881_v26, 0.0  ;;  %vm619_vm2 = vc.u32 %v617_v45, %v613_v44  ;;  %v618_v54 = vadd.s32 %v616_v51, %v610_v47  ;;  %v640_v2 = vshll.u32 %v637_v57, 16 }
  0xe3   :  { %v577_v6 = vpop.f32.mrf.mxu2  ;;  %965 = vadd.xlane.f32.xlu0 %v964_v4  ;;  %v887_v32 = vadd.f32 %v886_v31, %v885_v30  ;;  %v641_v34 = vshrl.u32 %v637_v57, 16 }
  0xe4   :  { %v1694_v7 = vadd.f32 %v577_v6, %v152_v55  ;;  %v591_v9 = vpop.f32.mrf.mxu3  ;;  %v620_v55 = vsel %vm619_vm2, 1, %v1565_v50  ;;  %v614_v6 = vshrl.u32 %v609_v42, 16  ;;  %vm644_vm3 = vc.u32 %v636_v0, %v640_v2 }
  0xe5   :  { %v1696_v11 = vadd.f32 %v591_v9, %v153_v56  ;;  %v634_v56 = vshrl.u32 %v1722_v52, 16  ;;  %v622_v59 = vadd.s32 %v620_v55, %v618_v54 }
  0xe6   :  { %v967_v13 = vsel %vm672_vm0, %v1694_v7, 0.0  ;;  %v976_v14 = vmul.f32 %v1694_v7, %v1694_v7 }
  0xe7   :  { %v968_v15 = vsel %vm672_vm0, %v1696_v11, 0.0  ;;  %v977_v16 = vmul.f32 %v1696_v11, %v1696_v11  ;;  %v638_v1 = vmul.u32 52429, %v634_v56  ;;  %v623_v9 = vadd.s32 %v622_v59, %v612_v58 }
  0xe8   :  { %v969_v18 = vadd.f32 %v968_v15, %v967_v13  ;;  %v981_v22 = vsel %vm672_vm0, %v976_v14, 0.0  ;;  %v646_v15 = vadd.s32 %v640_v2, %v636_v0 }
  0xe9   :  { %v982_v24 = vsel %vm672_vm0, %v977_v16, 0.0  ;;  %874 = vadd.xlane.f32.xlu2 %v873_v19  ;;  %v642_v14 = vshll.u32 %v638_v1, 16  ;;  %v624_v16 = vadd.s32 %v623_v9, %v614_v6 }
  0xea   :  { %970 = vadd.xlane.f32.xlu1 %v969_v18  ;;  %v983_v27 = vadd.f32 %v982_v24, %v981_v22  ;;  %v639_v22 = vmul.u32 52428, %v634_v56  ;;  %v645_v24 = vsel %vm644_vm3, 1, %v1565_v50 }
  0xeb   :  { %vm648_vm4 = vc.u32 %v646_v15, %v642_v14  ;;  %v1757_v15 = vld [vmem:[#allocation8] sm:$0x3] }
  0xec   :  { %984 = vadd.xlane.f32.xlu0 %v983_v27  ;;  %v625_v27 = vshrl.u32 %v624_v16, 2  ;;  %v647_v28 = vadd.s32 %v645_v24, %v639_v22  ;;  %v649_v30 = vsel %vm648_vm4, 1, %v1565_v50  ;;  %v643_v50 = vshrl.u32 %v638_v1, 16  ;;  %v1743_v1 = vld [vmem:[#allocation7 + $0x2] ss:$4 sm:$0x3] }
  0xed   :  { %v745_v24 = vperm.slane %v1743_v1, 1 }
  0xee   :  { %v651_v38 = vadd.s32 %v649_v30, %v647_v28 }
  0xf0   :  { %v652_v53 = vadd.s32 %v651_v38, %v641_v34 }
  0xf1   :  { %979 = vadd.xlane.f32.xlu2 %v978_v33 }
  0xf2   :  { %888 = vadd.xlane.f32.xlu1 %v887_v32  ;;  %v626_v32 = vmul.u32 5, %v625_v27  ;;  %v653_v0 = vadd.s32 %v652_v53, %v643_v50 }
  0xf4   :  { %v627_v51 = vsub.s32 %v596_v37, %v626_v32  ;;  %v654_v16 = vshrl.u32 %v653_v0, 2  ;;  %v1772_v32 = vld [vmem:[#allocation7 + $0x9] ss:$4 sm:$0x3] }
  0xf5   :  { %v835_v53 = vperm.slane %v1772_v32, 0 }
  0xf6   :  { %vm659_vm5 = vcmp.ne.s32.totalorder %v627_v51, 0  ;;  %vm661_vm6 = vcmp.lt.s32.totalorder %v627_v51, 0  ;;  %v665_v37 = vadd.s32 5, %v627_v51  ;;  %v655_v34 = vmul.u32 5, %v654_v16 }
  0xf7   :  { %vm1747_vm9 = vmand %vm661_vm6, %vm659_vm5 }
  0xf8   :  { %v667_v22 = vsel %vm1747_vm9, %v665_v37, %v627_v51  ;;  %v1785_v51 = vld [vmem:[#allocation7 + $0xa] ss:$4 sm:$0x3]  ;;  %v836_v37 = vperm.slane %v1772_v32, 1 }
  0xf9   :  { %vm1775_vm11 = vcmp.eq.s32.totalorder %v667_v22, 0  ;;  %v846_v6 = vperm.slane %v1785_v51, 0 }
 0x12c   :  { %v671_v60 = vpop.xlane.xlu0 %670 }
 0x12d   :  { %v1726_v61 = vmul.f32 0.00390625, %v671_v60  ;;  %v1740_v60 = vld [vmem:[#allocation7 + $0x1] ss:$4 sm:$0x3] }
 0x12e   :  { %v686_v4 = vpop.xlane.xlu2 %685  ;;  %v733_v9 = vperm.slane %v1740_v60, 0 }
 0x12f   :  { %v692_v12 = vmul.f32 0.00390625, %v686_v4  ;;  %v694_v49 = vmul.f32 %v1726_v61, %v1726_v61  ;;  %v723_v14 = vsub.f32 %v1622_v10, %v1726_v61  ;;  %v760_v10 = vperm.slane %v1757_v15, 0 }
 0x131   :  { %v696_v13 = vsub.f32 %v692_v12, %v694_v49  ;;  %v734_v12 = vperm.slane %v1740_v60, 1 }
 0x133   :  { %v698_v18 = vmax.f32 %v696_v13, 0.0  ;;  %v722_v13 = vsub.f32 %v1620_v8, %v1726_v61  ;;  %v761_v61 = vperm.slane %v1757_v15, 1 }
 0x135   :  { %v774_v19 = vpop.xlane.xlu1 %773  ;;  %v700_v25 = vadd.f32 1e-05, %v698_v18  ;;  %v744_v18 = vperm.slane %v1743_v1, 0 }
 0x136   :  { %v677_v26 = vpop.xlane.xlu0 %676  ;;  %v1730_v29 = vmul.f32 0.00390625, %v774_v19 }
 0x137   :  { %1413 = vrsqrt.f32 %v700_v25  ;;  %v1734_v39 = vmul.f32 0.00390625, %v677_v26  ;;  %vm708_vm7 = vweird.f32 %v700_v25 }
 0x138   :  { %v796_v31 = vmul.f32 %v1730_v29, %v1730_v29 }
 0x139   :  { %v695_v45 = vmul.f32 %v1734_v39, %v1734_v39 }
 0x13d   :  { %v788_v33 = vpop.xlane.xlu1 %787  ;;  %v1414_v41 = vpop.eup %1413 }
 0x13e   :  { %v794_v40 = vmul.f32 0.00390625, %v788_v33  ;;  %v691_v42 = vpop.xlane.xlu0 %690  ;;  %v703_v43 = vmul.f32 %v1414_v41, %v700_v25  ;;  %vm709_vm8 = vweird.f32 %v1414_v41 }
 0x13f   :  { %v693_v47 = vmul.f32 0.00390625, %v691_v42  ;;  %vm710_vm10 = vmor %vm708_vm7, %vm709_vm8 }
 0x140   :  { %v798_v44 = vsub.f32 %v794_v40, %v796_v31  ;;  %v704_v54 = vmul.f32 %v1414_v41, %v703_v43 }
 0x141   :  { %v697_v56 = vsub.f32 %v693_v47, %v695_v45 }
 0x142   :  { %v800_v55 = vmax.f32 %v798_v44, 0.0  ;;  %v705_v58 = vmul.f32 0.5, %v704_v54 }
 0x143   :  { %v699_v59 = vmax.f32 %v697_v56, 0.0 }
 0x144   :  { %v1738_v57 = vadd.f32 1e-05, %v800_v55  ;;  %v706_v2 = vsub.f32 1.5, %v705_v58 }
 0x145   :  { %v1745_v4 = vadd.f32 1e-05, %v699_v59  ;;  %v779_v38 = vpop.xlane.xlu1 %778 }
 0x146   :  { %1415 = vrsqrt.f32 %v1738_v57  ;;  %v707_v49 = vmul.f32 %v1414_v41, %v706_v2  ;;  %v1789_v55 = vmul.f32 0.00390625, %v779_v38  ;;  %v656_v2 = vsub.s32 %v1722_v52, %v655_v34 }
 0x147   :  { %1417 = vrsqrt.f32 %v1745_v4  ;;  %vm810_vm12 = vweird.f32 %v1738_v57  ;;  %v847_v34 = vperm.slane %v1785_v51, 1  ;;  %vm718_vm2 = vweird.f32 %v1745_v4 }
 0x148   :  { %v711_v19 = vsel %vm710_vm10, %v1414_v41, %v707_v49  ;;  %v797_v52 = vmul.f32 %v1789_v55, %v1789_v55  ;;  %vm660_vm14 = vcmp.ne.s32.totalorder %v656_v2, 0  ;;  %vm662_vm15 = vcmp.lt.s32.totalorder %v656_v2, 0 }
 0x149   :  { %v726_v25 = vmul.f32 %v722_v13, %v711_v19  ;;  %v727_v26 = vmul.f32 %v723_v14, %v711_v19  ;;  %v824_v14 = vsub.f32 %v1632_v17, %v1730_v29  ;;  %v1811_v17 = vld [vmem:[#allocation8 + $0x2] sm:$0x3]  ;;  %vm1817_vm3 = vmand %vm662_vm15, %vm660_vm14 }
 0x14b   :  { %v737_v30 = vmul.f32 %v733_v9, %v726_v25  ;;  %v738_v31 = vmul.f32 %v734_v12, %v727_v26 }
 0x14c   :  { %v870_v8 = vpop.xlane.xlu2 %869  ;;  %v1416_v27 = vpop.eup %1415 }
 0x14d   :  { %v1766_v28 = vmul.f32 0.00390625, %v870_v8  ;;  %v805_v33 = vmul.f32 %v1416_v27, %v1738_v57  ;;  %v1418_v44 = vpop.eup %1417  ;;  %v748_v45 = vadd.f32 %v744_v18, %v737_v30  ;;  %v749_v47 = vadd.f32 %v745_v24, %v738_v31 }
 0x14e   :  { %v884_v40 = vpop.xlane.xlu0 %883  ;;  %v713_v54 = vmul.f32 %v1418_v44, %v1745_v4  ;;  %vm811_vm13 = vweird.f32 %v1416_v27  ;;  %v825_v8 = vsub.f32 %v1634_v20, %v1730_v29  ;;  %vm719_vm1 = vweird.f32 %v1418_v44 }
 0x14f   :  { %v892_v42 = vmul.f32 %v1766_v28, %v1766_v28  ;;  %v890_v43 = vmul.f32 0.00390625, %v884_v40  ;;  %v806_v50 = vmul.f32 %v1416_v27, %v805_v33  ;;  %v764_v58 = vsel %vm1775_vm11, %v760_v10, %v748_v45  ;;  %vm812_vm0 = vmor %vm810_vm12, %vm811_vm13 }
 0x150   :  { %v765_v59 = vsel %vm1775_vm11, %v761_v61, %v749_v47  ;;  %768 = vst [vmem:[#allocation10] sm:$0xff] %v764_v58  ;;  %v714_v49 = vmul.f32 %v1418_v44, %v713_v54  ;;  %v666_v40 = vadd.s32 5, %v656_v2  ;;  %v724_v47 = vsub.f32 %v1636_v21, %v1734_v39  ;;  %vm720_vm4 = vmor %vm718_vm2, %vm719_vm1 }
 0x151   :  { %v894_v56 = vsub.f32 %v890_v43, %v892_v42  ;;  %v807_v0 = vmul.f32 0.5, %v806_v50  ;;  %769 = vst [vmem:[#allocation10 + $0x8] sm:$0xff] %v765_v59  ;;  %v725_v50 = vsub.f32 %v1638_v23, %v1734_v39  ;;  %v857_v54 = vperm.slane %v1811_v17, 1 }
 0x152   :  { %v715_v22 = vmul.f32 0.5, %v714_v49  ;;  %v668_v21 = vsel %vm1817_vm3, %v666_v40, %v656_v2 }
 0x153   :  { %v896_v13 = vmax.f32 %v894_v56, 0.0  ;;  %v808_v16 = vsub.f32 1.5, %v807_v0  ;;  %vm1854_vm5 = vcmp.eq.s32.totalorder %v668_v21, 0 }
 0x154   :  { %v793_v19 = vpop.xlane.xlu2 %792  ;;  %v716_v57 = vsub.f32 1.5, %v715_v22 }
 0x155   :  { %v1805_v25 = vadd.f32 1e-05, %v896_v13  ;;  %v795_v26 = vmul.f32 0.00390625, %v793_v19  ;;  %v809_v30 = vmul.f32 %v1416_v27, %v808_v16 }
 0x156   :  { %v966_v31 = vpop.xlane.xlu0 %965  ;;  %v717_v43 = vmul.f32 %v1418_v44, %v716_v57  ;;  %v1866_v57 = vld [vmem:[#allocation7 + $0x12] ss:$4 sm:$0x3] }
 0x157   :  { %1419 = vrsqrt.f32 %v1805_v25  ;;  %v799_v33 = vsub.f32 %v795_v26, %v797_v52  ;;  %v813_v38 = vsel %vm812_vm0, %v1416_v27, %v809_v30  ;;  %v856_v27 = vperm.slane %v1811_v17, 0 }
 0x158   :  { %v828_v42 = vmul.f32 %v824_v14, %v813_v38  ;;  %v829_v20 = vmul.f32 %v825_v8, %v813_v38  ;;  %v721_v58 = vsel %vm720_vm4, %v1418_v44, %v717_v43  ;;  %v1868_v40 = vmul.f32 0.00390625, %v966_v31 }
 0x159   :  { %v801_v45 = vmax.f32 %v799_v33, 0.0  ;;  %v728_v0 = vmul.f32 %v724_v47, %v721_v58  ;;  %v729_v23 = vmul.f32 %v725_v50, %v721_v58  ;;  %v943_v47 = vperm.slane %v1866_v57, 1 }
 0x15a   :  { %v839_v4 = vmul.f32 %v835_v53, %v828_v42  ;;  %v840_v56 = vmul.f32 %v836_v37, %v829_v20  ;;  %vm906_vm7 = vweird.f32 %v1805_v25  ;;  %v1017_v17 = vsub.f32 %v1686_v63, %v1868_v40 }
 0x15b   :  { %v1832_v59 = vadd.f32 1e-05, %v801_v45  ;;  %v739_v44 = vmul.f32 %v733_v9, %v728_v0  ;;  %v740_v19 = vmul.f32 %v734_v12, %v729_v23  ;;  %v1858_v9 = vld [vmem:[#allocation7 + $0x11] ss:$4 sm:$0x3]  ;;  %v942_v45 = vperm.slane %v1866_v57, 0 }
 0x15c   :  { %v875_v49 = vpop.xlane.xlu2 %874  ;;  %v850_v14 = vadd.f32 %v846_v6, %v839_v4  ;;  %v851_v16 = vadd.f32 %v847_v34, %v840_v56  ;;  %v931_v31 = vperm.slane %v1858_v9, 0  ;;  %v932_v43 = vperm.slane %v1858_v9, 1  ;;  %v1887_v56 = vld [vmem:[#allocation8 + $0x4] sm:$0x3] }
 0x15d   :  { %v971_v39 = vpop.xlane.xlu1 %970  ;;  %v1420_v13 = vpop.eup %1419  ;;  %1421 = vrsqrt.f32 %v1832_v59  ;;  %v750_v12 = vadd.f32 %v744_v18, %v739_v44  ;;  %v751_v30 = vadd.f32 %v745_v24, %v740_v19  ;;  %v1870_v42 = vmul.f32 0.00390625, %v875_v49 }
 0x15e   :  { %v901_v2 = vmul.f32 %v1420_v13, %v1805_v25  ;;  %v860_v52 = vsel %vm1775_vm11, %v856_v27, %v850_v14  ;;  %v861_v26 = vsel %vm1775_vm11, %v857_v54, %v851_v16  ;;  %v1860_v60 = vmul.f32 0.00390625, %v971_v39 }
 0x15f   :  { %v985_v22 = vpop.xlane.xlu0 %984  ;;  %864 = vst [vmem:[#allocation10 + $0x10] sm:$0xff] %v860_v52  ;;  %v766_v20 = vsel %vm1854_vm5, %v760_v10, %v750_v12  ;;  %v767_v1 = vsel %vm1854_vm5, %v761_v61, %v751_v30  ;;  %vm907_vm6 = vweird.f32 %v1420_v13  ;;  %v893_v21 = vmul.f32 %v1870_v42, %v1870_v42 }
 0x160   :  { %v902_v33 = vmul.f32 %v1420_v13, %v901_v2  ;;  %v987_v38 = vmul.f32 0.00390625, %v985_v22  ;;  %865 = vst [vmem:[#allocation10 + $0x18] sm:$0xff] %v861_v26  ;;  %v989_v24 = vmul.f32 %v1860_v60, %v1860_v60  ;;  %v988_v23 = vmul.f32 %v1868_v40, %v1868_v40  ;;  %vm908_vm8 = vmor %vm906_vm7, %vm907_vm6 }
 0x161   :  { %770 = vst [vmem:[#allocation10 + $0x40] sm:$0x3] %v766_v20  ;;  %v920_v16 = vsub.f32 %v1666_v46, %v1766_v28  ;;  %v921_v44 = vsub.f32 %v1668_v48, %v1766_v28  ;;  %v952_v22 = vperm.slane %v1887_v56, 0  ;;  %v953_v20 = vperm.slane %v1887_v56, 1 }
 0x162   :  { %v903_v18 = vmul.f32 0.5, %v902_v33  ;;  %771 = vst [vmem:[#allocation10 + $0x48] sm:$0x3] %v767_v1  ;;  %v991_v61 = vsub.f32 %v987_v38, %v989_v24  ;;  %vm820_vm10 = vweird.f32 %v1832_v59 }
 0x163   :  { %v1422_v29 = vpop.eup %1421 }
 0x164   :  { %v904_v10 = vsub.f32 1.5, %v903_v18  ;;  %v815_v15 = vmul.f32 %v1422_v29, %v1832_v59  ;;  %v980_v4 = vpop.xlane.xlu2 %979  ;;  %v993_v14 = vmax.f32 %v991_v61, 0.0  ;;  %vm821_vm9 = vweird.f32 %v1422_v29 }
 0x165   :  { %v889_v50 = vpop.xlane.xlu1 %888  ;;  %v986_v0 = vmul.f32 0.00390625, %v980_v4  ;;  %v826_v18 = vsub.f32 %v1654_v35, %v1789_v55  ;;  %vm822_vm12 = vmor %vm820_vm10, %vm821_vm9 }
 0x166   :  { %v891_v58 = vmul.f32 0.00390625, %v889_v50  ;;  %v905_v39 = vmul.f32 %v1420_v13, %v904_v10  ;;  %v816_v49 = vmul.f32 %v1422_v29, %v815_v15  ;;  %v1900_v12 = vadd.f32 1e-05, %v993_v14 }
 0x167   :  { %v990_v2 = vsub.f32 %v986_v0, %v988_v23  ;;  %v827_v10 = vsub.f32 %v1656_v36, %v1789_v55 }
 0x168   :  { %v895_v19 = vsub.f32 %v891_v58, %v893_v21  ;;  %v909_v52 = vsel %vm908_vm8, %v1420_v13, %v905_v39  ;;  %v817_v26 = vmul.f32 0.5, %v816_v49  ;;  %1423 = vrsqrt.f32 %v1900_v12  ;;  %v1025_v49 = vld [vmem:[#allocation7 + $0x19] ss:$4 sm:$0x3] }
 0x169   :  { %v924_v30 = vmul.f32 %v920_v16, %v909_v52  ;;  %v925_v25 = vmul.f32 %v921_v44, %v909_v52  ;;  %v992_v38 = vmax.f32 %v990_v2, 0.0  ;;  %v1028_v2 = vperm.slane %v1025_v49, 1 }
 0x16a   :  { %v897_v33 = vmax.f32 %v895_v19, 0.0  ;;  %v818_v46 = vsub.f32 1.5, %v817_v26  ;;  %vm1012_vm14 = vweird.f32 %v1900_v12 }
 0x16b   :  { %v935_v48 = vmul.f32 %v931_v31, %v924_v30  ;;  %v936_v28 = vmul.f32 %v932_v43, %v925_v25  ;;  %v1910_v1 = vadd.f32 1e-05, %v992_v38  ;;  %v1046_v30 = vld [vmem:[#allocation8 + $0x6] sm:$0x3] }
 0x16c   :  { %v1908_v13 = vadd.f32 1e-05, %v897_v33  ;;  %v819_v24 = vmul.f32 %v1422_v29, %v818_v46  ;;  %v1048_v63 = vperm.slane %v1046_v30, 0 }
 0x16d   :  { %v946_v15 = vadd.f32 %v942_v45, %v935_v48  ;;  %v947_v61 = vadd.f32 %v943_v47, %v936_v28  ;;  %v1018_v48 = vsub.f32 %v1694_v7, %v1860_v60  ;;  %v1019_v28 = vsub.f32 %v1696_v11, %v1860_v60 }
 0x16e   :  { %1425 = vrsqrt.f32 %v1908_v13  ;;  %v823_v50 = vsel %vm822_vm12, %v1422_v29, %v819_v24  ;;  %v1424_v4 = vpop.eup %1423  ;;  %vm916_vm2 = vweird.f32 %v1908_v13  ;;  %v923_v7 = vsub.f32 %v1690_v5, %v1870_v42 }
 0x16f   :  { %1427 = vrsqrt.f32 %v1910_v1  ;;  %v956_v35 = vsel %vm1775_vm11, %v952_v22, %v946_v15  ;;  %v957_v36 = vsel %vm1775_vm11, %v953_v20, %v947_v61  ;;  %v830_v55 = vmul.f32 %v826_v18, %v823_v50 }
 0x170   :  { %v831_v59 = vmul.f32 %v827_v10, %v823_v50  ;;  %960 = vst [vmem:[#allocation10 + $0x20] sm:$0xff] %v956_v35  ;;  %v1007_v21 = vmul.f32 %v1424_v4, %v1900_v12  ;;  %vm1013_vm13 = vweird.f32 %v1424_v4  ;;  %v922_v12 = vsub.f32 %v1688_v3, %v1870_v42 }
 0x171   :  { %961 = vst [vmem:[#allocation10 + $0x28] sm:$0xff] %v957_v36  ;;  %v841_v29 = vmul.f32 %v835_v53, %v830_v55  ;;  %vm1014_vm15 = vmor %vm1012_vm14, %vm1013_vm13  ;;  %vm1002_vm4 = vweird.f32 %v1910_v1  ;;  %v1049_v60 = vperm.slane %v1046_v30, 1 }
 0x172   :  { %v842_v58 = vmul.f32 %v836_v37, %v831_v59  ;;  %v1008_v14 = vmul.f32 %v1424_v4, %v1007_v21  ;;  %v1949_v37 = vld [vmem:[#allocation7 + $0x1a] ss:$4 sm:$0x3] }
 0x173   :  { %v852_v23 = vadd.f32 %v846_v6, %v841_v29  ;;  %v1039_v33 = vperm.slane %v1949_v37, 1 }
 0x174   :  { %v1426_v0 = vpop.eup %1425  ;;  %v853_v39 = vadd.f32 %v847_v34, %v842_v58  ;;  %v1009_v6 = vmul.f32 0.5, %v1008_v14  ;;  %v1027_v34 = vperm.slane %v1025_v49, 0 }
 0x175   :  { %v1428_v16 = vpop.eup %1427  ;;  %v911_v44 = vmul.f32 %v1426_v0, %v1908_v13  ;;  %v862_v32 = vsel %vm1854_vm5, %v856_v27, %v852_v23  ;;  %v1016_v27 = vsub.f32 %v1684_v62, %v1868_v40  ;;  %vm917_vm0 = vweird.f32 %v1426_v0 }
 0x176   :  { %v863_v53 = vsel %vm1854_vm5, %v857_v54, %v853_v39  ;;  %v997_v51 = vmul.f32 %v1428_v16, %v1910_v1  ;;  %866 = vst [vmem:[#allocation10 + $0x50] sm:$0x3] %v862_v32  ;;  %v1010_v52 = vsub.f32 1.5, %v1009_v6  ;;  %v1038_v54 = vperm.slane %v1949_v37, 0  ;;  %vm918_vm3 = vmor %vm916_vm2, %vm917_vm0 }
 0x177   :  { %v912_v19 = vmul.f32 %v1426_v0, %v911_v44  ;;  %867 = vst [vmem:[#allocation10 + $0x58] sm:$0x3] %v863_v53  ;;  %vm1003_vm1 = vweird.f32 %v1428_v16 }
 0x178   :  { %v998_v26 = vmul.f32 %v1428_v16, %v997_v51  ;;  %v1011_v38 = vmul.f32 %v1424_v4, %v1010_v52  ;;  %vm1004_vm6 = vmor %vm1002_vm4, %vm1003_vm1 }
 0x179   :  { %v913_v25 = vmul.f32 0.5, %v912_v19 }
 0x17a   :  { %v999_v46 = vmul.f32 0.5, %v998_v26  ;;  %v1015_v40 = vsel %vm1014_vm15, %v1424_v4, %v1011_v38 }
 0x17b   :  { %v914_v62 = vsub.f32 1.5, %v913_v25  ;;  %v1022_v24 = vmul.f32 %v1018_v48, %v1015_v40  ;;  %v1023_v10 = vmul.f32 %v1019_v28, %v1015_v40 }
 0x17c   :  { %v1000_v18 = vsub.f32 1.5, %v999_v46 }
 0x17d   :  { %v915_v15 = vmul.f32 %v1426_v0, %v914_v62  ;;  %v1033_v61 = vmul.f32 %v1027_v34, %v1022_v24  ;;  %v1034_v50 = vmul.f32 %v1028_v2, %v1023_v10 }
 0x17e   :  { %v1001_v11 = vmul.f32 %v1428_v16, %v1000_v18 }
 0x17f   :  { %v919_v35 = vsel %vm918_vm3, %v1426_v0, %v915_v15  ;;  %v1044_v4 = vadd.f32 %v1038_v54, %v1033_v61  ;;  %v1045_v13 = vadd.f32 %v1039_v33, %v1034_v50 }
 0x180   :  { %v926_v36 = vmul.f32 %v922_v12, %v919_v35  ;;  %v927_v55 = vmul.f32 %v923_v7, %v919_v35  ;;  %v1005_v59 = vsel %vm1004_vm6, %v1428_v16, %v1001_v11 }
 0x181   :  { %v1020_v29 = vmul.f32 %v1016_v27, %v1005_v59  ;;  %v1021_v58 = vmul.f32 %v1017_v17, %v1005_v59  ;;  %v1054_v42 = vsel %vm1854_vm5, %v1048_v63, %v1044_v4  ;;  %v1055_v1 = vsel %vm1854_vm5, %v1049_v60, %v1045_v13 }
 0x182   :  { %v937_v3 = vmul.f32 %v931_v31, %v926_v36  ;;  %v938_v5 = vmul.f32 %v932_v43, %v927_v55  ;;  %1058 = vst [vmem:[#allocation10 + $0x70] sm:$0x3] %v1054_v42 }
 0x183   :  { %v1031_v21 = vmul.f32 %v1027_v34, %v1020_v29  ;;  %v1032_v0 = vmul.f32 %v1028_v2, %v1021_v58  ;;  %1059 = vst [vmem:[#allocation10 + $0x78] sm:$0x3] %v1055_v1 }
 0x184   :  { %v948_v23 = vadd.f32 %v942_v45, %v937_v3  ;;  %v949_v39 = vadd.f32 %v943_v47, %v938_v5 }
 0x185   :  { %v1042_v9 = vadd.f32 %v1038_v54, %v1031_v21  ;;  %v1043_v31 = vadd.f32 %v1039_v33, %v1032_v0 }
 0x186   :  { %v958_v43 = vsel %vm1854_vm5, %v952_v22, %v948_v23  ;;  %v959_v57 = vsel %vm1854_vm5, %v953_v20, %v949_v39 }
 0x187   :  { %962 = vst [vmem:[#allocation10 + $0x60] sm:$0x3] %v958_v43  ;;  %v1052_v45 = vsel %vm1775_vm11, %v1048_v63, %v1042_v9  ;;  %v1053_v47 = vsel %vm1775_vm11, %v1049_v60, %v1043_v31 }
 0x188   :  { %963 = vst [vmem:[#allocation10 + $0x68] sm:$0x3] %v959_v57 }
 0x189   :  { %1056 = vst [vmem:[#allocation10 + $0x30] sm:$0xff] %v1052_v45 }
 0x18a   :  { %1057 = vst [vmem:[#allocation10 + $0x38] sm:$0xff] %v1053_v47 }
 0x18b   :  { %1072 = dma.vmem_to_hbm [thread:$0]  %s1065_s3, 2048, %s1067_s13, [#allocation4], %s1567_s4, %s1567_s4, %s1568_s14  }
 0x18c   :  { %1555 = dma.done.wait [#allocation4], 2048  }
 0x18d   :  { %1556 = vsyncadd [#allocation4], 4294965248 }
 0x18e   :  { %1077 = vsyncpa [#allocation3], 1 }
 0x18f   :  { %1078 = vsyncpa [#allocation6], 1 }
 0x190   :  { %1079 = vsyncpa [#allocation9], 1 }
 0x191   :  { %1080 = vsyncpa [#allocation4], 1 }

</bundles_post_ra>
